<compile_context>
chip_gen: v5e
topology: v5e:2x2
jax: 0.10.0
libtpu: 0.0.40
codegen_flags: <defaults>
</compile_context>

<pallas_src>
import functools

import jax
import jax.numpy as jnp
from jax.experimental import pallas as pl
from jax.experimental.pallas import tpu as pltpu


def lstm_kernel(num_layers, seq_len, x_ref, wih0_ref, wihr_ref, whh_ref, b_ref,
                wlin_ref, blin_ref, out_ref):
    S = seq_len
    SB, _ = x_ref.shape
    B = SB // S
    H = whh_ref.shape[1]

    layer_in = x_ref[...]                            # (S*B, D) raw input
    h_last = None
    for layer in range(num_layers):
        # ---- hoisted input projection: one (S*B, in) @ (in, 4H) matmul + bias
        if layer == 0:
            wih = wih0_ref[...]                      # (D, 4H)
        else:
            wih = wihr_ref[layer - 1]                # (H, 4H)
        bias = b_ref[layer]                          # (1, 4H) = b_ih + b_hh
        proj = jnp.dot(layer_in, wih,
                       preferred_element_type=jnp.float32) + bias   # (S*B, 4H)

        whh = whh_ref[layer]                         # (H, 4H)
        h = jnp.zeros((B, H), jnp.float32)
        c = jnp.zeros((B, H), jnp.float32)
        hs = []
        for t in range(S):                           # static unroll, S small
            gates = proj[t * B:(t + 1) * B, :] + jnp.dot(
                h, whh, preferred_element_type=jnp.float32)          # (B, 4H)
            # two full-width EUP pushes instead of 4 quarter-lane ones
            sig = jax.nn.sigmoid(gates)
            th = jnp.tanh(gates)
            i_g = sig[:, 0:H]
            f_g = sig[:, H:2 * H]
            g_g = th[:, 2 * H:3 * H]
            o_g = sig[:, 3 * H:4 * H]
            c = f_g * c + i_g * g_g
            h = o_g * jnp.tanh(c)
            hs.append(h)
        if layer < num_layers - 1:
            # next layer's GEMM operand, time-major rows (t*B + b) -- in vregs
            layer_in = jnp.concatenate(hs, axis=0)   # (S*B, H)
        h_last = h

    # final Linear(H, 1) as a lane reduction (skip an N=1 MXU matmul)
    out_ref[...] = (jnp.sum(h_last * wlin_ref[...], axis=-1, keepdims=True)
                    + blin_ref[...])


def time_series_predictor(x, params, hidden_dim, num_layers):
    B, S, D = x.shape
    H = hidden_dim
    G = 4 * H

    # time-major, flattened layer-0 input: row s*B + b  <->  (s, b). No padding.
    x_t = jnp.transpose(x, (1, 0, 2)).reshape(S * B, D).astype(jnp.float32)

    wih0 = params["w_ih_0"].T.astype(jnp.float32)                     # (D, 4H)
    if num_layers > 1:
        wihr = jnp.stack([params[f"w_ih_{l}"].T.astype(jnp.float32)
                          for l in range(1, num_layers)])             # (L-1,H,4H)
    else:
        wihr = jnp.zeros((1, H, G), jnp.float32)                      # unused
    whh = jnp.stack([params[f"w_hh_{l}"].T.astype(jnp.float32)
                     for l in range(num_layers)])                     # (L, H, 4H)
    bias = jnp.stack([(params[f"b_ih_{l}"] + params[f"b_hh_{l}"]).reshape(1, G)
                      for l in range(num_layers)]).astype(jnp.float32)  # (L,1,4H)
    wlin = params["w_lin"].astype(jnp.float32)                        # (1, H)
    blin = params["b_lin"].reshape(1, 1).astype(jnp.float32)          # (1, 1)

    vmem_spec = pl.BlockSpec(memory_space=pltpu.MemorySpace.VMEM)
    out = pl.pallas_call(
        functools.partial(lstm_kernel, num_layers, S),
        out_shape=jax.ShapeDtypeStruct((B, 1), jnp.float32),
        in_specs=[vmem_spec] * 7,
        out_specs=vmem_spec,
    )(x_t, wih0, wihr, whh, bias, wlin, blin)
    return out


def lstm_ref(x, params, H, num_layers):
    """Pure-JAX reference matching torch.nn.LSTM(batch_first=True) + Linear."""
    B, S, _ = x.shape
    layer_in = x
    for l in range(num_layers):
        wih, whh = params[f"w_ih_{l}"], params[f"w_hh_{l}"]
        bih, bhh = params[f"b_ih_{l}"], params[f"b_hh_{l}"]
        h = jnp.zeros((B, H), jnp.float32)
        c = jnp.zeros((B, H), jnp.float32)
        outs = []
        for t in range(S):
            xt = layer_in[:, t, :]
            g = xt @ wih.T + bih + h @ whh.T + bhh
            i = jax.nn.sigmoid(g[:, 0:H])
            f = jax.nn.sigmoid(g[:, H:2 * H])
            gg = jnp.tanh(g[:, 2 * H:3 * H])
            o = jax.nn.sigmoid(g[:, 3 * H:4 * H])
            c = f * c + i * gg
            h = o * jnp.tanh(c)
            outs.append(h)
        layer_in = jnp.stack(outs, axis=1)
    last = layer_in[:, -1, :]
    return last @ params["w_lin"].T + params["b_lin"]


def init_params(key, input_dim, hidden_dim, num_layers):
    H = hidden_dim
    k = 1.0 / jnp.sqrt(H)
    params = {}
    for l in range(num_layers):
        in_dim = input_dim if l == 0 else H
        key, k1, k2, k3, k4 = jax.random.split(key, 5)
        params[f"w_ih_{l}"] = jax.random.uniform(k1, (4 * H, in_dim), jnp.float32, -k, k)
        params[f"w_hh_{l}"] = jax.random.uniform(k2, (4 * H, H), jnp.float32, -k, k)
        params[f"b_ih_{l}"] = jax.random.uniform(k3, (4 * H,), jnp.float32, -k, k)
        params[f"b_hh_{l}"] = jax.random.uniform(k4, (4 * H,), jnp.float32, -k, k)
    key, k5, k6 = jax.random.split(key, 3)
    params["w_lin"] = jax.random.uniform(k5, (1, H), jnp.float32, -k, k)
    params["b_lin"] = jax.random.uniform(k6, (1,), jnp.float32, -k, k)
    return params


if __name__ == "__main__":
    B, S, D, H, L = 2, 8, 4, 32, 2
    key = jax.random.PRNGKey(0)
    key, kx, kp = jax.random.split(key, 3)
    x = jax.random.normal(kx, (B, S, D), jnp.float32)
    params = init_params(kp, D, H, L)

    out = time_series_predictor(x, params, H, L)
    out = jax.block_until_ready(out)

    ref = lstm_ref(x, params, H, L)
    assert out.shape == (B, 1)
    assert jnp.allclose(out, ref, atol=1e-4, rtol=1e-4), (out, ref)
    print("KERNEL_OK")
</pallas_src>

<mosaic_0001>
module attributes {stable_mosaic.version = 11 : i64} {
  func.func @lstm_kernel(%arg0: memref<16x4xf32, #tpu.memory_space<vmem>>, %arg1: memref<4x128xf32, #tpu.memory_space<vmem>>, %arg2: memref<1x32x128xf32, #tpu.memory_space<vmem>>, %arg3: memref<2x32x128xf32, #tpu.memory_space<vmem>>, %arg4: memref<2x1x128xf32, #tpu.memory_space<vmem>>, %arg5: memref<1x32xf32, #tpu.memory_space<vmem>>, %arg6: memref<1x1xf32, #tpu.memory_space<vmem>>, %arg7: memref<2x1xf32, #tpu.memory_space<vmem>>) attributes {dimension_semantics = [], scalar_prefetch = 0 : i64, scratch_operands = 0 : i64, tpu.core_type = #tpu.core_type<tc>} {
    %c0 = arith.constant 0 : index
    %c0_0 = arith.constant 0 : index
    %0 = vector.load %arg0[%c0, %c0_0] : memref<16x4xf32, #tpu.memory_space<vmem>>, vector<16x4xf32>
    %c0_1 = arith.constant 0 : index
    %c0_2 = arith.constant 0 : index
    %1 = vector.load %arg1[%c0_1, %c0_2] : memref<4x128xf32, #tpu.memory_space<vmem>>, vector<4x128xf32>
    %c0_3 = arith.constant 0 : index
    %c0_4 = arith.constant 0 : index
    %c0_5 = arith.constant 0 : index
    %2 = vector.load %arg4[%c0_3, %c0_4, %c0_5] : memref<2x1x128xf32, #tpu.memory_space<vmem>>, vector<1x1x128xf32>
    %3 = vector.shape_cast %2 : vector<1x1x128xf32> to vector<1x128xf32>
    %cst = arith.constant dense<0.000000e+00> : vector<16x128xf32>
    %4 = tpu.matmul %0, %1, %cst {dimension_numbers = #tpu.dot_dimension_numbers<[1], [0], [0], [1], [0, 0, 1, 1], [], []>} : vector<16x4xf32>, vector<4x128xf32>, vector<16x128xf32> -> vector<16x128xf32>
    %5 = vector.broadcast %3 : vector<1x128xf32> to vector<16x128xf32>
    %6 = arith.addf %4, %5 : vector<16x128xf32>
    %c0_6 = arith.constant 0 : index
    %c0_7 = arith.constant 0 : index
    %c0_8 = arith.constant 0 : index
    %7 = vector.load %arg3[%c0_6, %c0_7, %c0_8] : memref<2x32x128xf32, #tpu.memory_space<vmem>>, vector<1x32x128xf32>
    %8 = vector.shape_cast %7 : vector<1x32x128xf32> to vector<32x128xf32>
    %cst_9 = arith.constant 0.000000e+00 : f32
    %9 = vector.broadcast %cst_9 : f32 to vector<2x32xf32>
    %cst_10 = arith.constant 0.000000e+00 : f32
    %10 = vector.broadcast %cst_10 : f32 to vector<2x32xf32>
    %11 = vector.extract_strided_slice %6 {offsets = [0, 0], sizes = [2, 128], strides = [1, 1]} : vector<16x128xf32> to vector<2x128xf32>
    %cst_11 = arith.constant dense<0.000000e+00> : vector<2x128xf32>
    %12 = tpu.matmul %9, %8, %cst_11 {dimension_numbers = #tpu.dot_dimension_numbers<[1], [0], [0], [1], [0, 0, 1, 1], [], []>} : vector<2x32xf32>, vector<32x128xf32>, vector<2x128xf32> -> vector<2x128xf32>
    %13 = arith.addf %11, %12 : vector<2x128xf32>
    %14 = arith.negf %13 : vector<2x128xf32>
    %15 = math.exp %14 : vector<2x128xf32>
    %cst_12 = arith.constant 1.000000e+00 : f32
    %16 = vector.broadcast %cst_12 : f32 to vector<2x128xf32>
    %17 = arith.addf %16, %15 : vector<2x128xf32>
    %18 = arith.divf %16, %17 : vector<2x128xf32>
    %19 = math.tanh %13 : vector<2x128xf32>
    %20 = vector.extract_strided_slice %18 {offsets = [0, 0], sizes = [2, 32], strides = [1, 1]} : vector<2x128xf32> to vector<2x32xf32>
    %21 = vector.extract_strided_slice %18 {offsets = [0, 32], sizes = [2, 32], strides = [1, 1]} : vector<2x128xf32> to vector<2x32xf32>
    %22 = vector.extract_strided_slice %19 {offsets = [0, 64], sizes = [2, 32], strides = [1, 1]} : vector<2x128xf32> to vector<2x32xf32>
    %23 = vector.extract_strided_slice %18 {offsets = [0, 96], sizes = [2, 32], strides = [1, 1]} : vector<2x128xf32> to vector<2x32xf32>
    %24 = arith.mulf %21, %10 : vector<2x32xf32>
    %25 = arith.mulf %20, %22 : vector<2x32xf32>
    %26 = arith.addf %24, %25 : vector<2x32xf32>
    %27 = math.tanh %26 : vector<2x32xf32>
    %28 = arith.mulf %23, %27 : vector<2x32xf32>
    %29 = vector.extract_strided_slice %6 {offsets = [2, 0], sizes = [2, 128], strides = [1, 1]} : vector<16x128xf32> to vector<2x128xf32>
    %cst_13 = arith.constant dense<0.000000e+00> : vector<2x128xf32>
    %30 = tpu.matmul %28, %8, %cst_13 {dimension_numbers = #tpu.dot_dimension_numbers<[1], [0], [0], [1], [0, 0, 1, 1], [], []>} : vector<2x32xf32>, vector<32x128xf32>, vector<2x128xf32> -> vector<2x128xf32>
    %31 = arith.addf %29, %30 : vector<2x128xf32>
    %32 = arith.negf %31 : vector<2x128xf32>
    %33 = math.exp %32 : vector<2x128xf32>
    %cst_14 = arith.constant 1.000000e+00 : f32
    %34 = vector.broadcast %cst_14 : f32 to vector<2x128xf32>
    %35 = arith.addf %34, %33 : vector<2x128xf32>
    %36 = arith.divf %34, %35 : vector<2x128xf32>
    %37 = math.tanh %31 : vector<2x128xf32>
    %38 = vector.extract_strided_slice %36 {offsets = [0, 0], sizes = [2, 32], strides = [1, 1]} : vector<2x128xf32> to vector<2x32xf32>
    %39 = vector.extract_strided_slice %36 {offsets = [0, 32], sizes = [2, 32], strides = [1, 1]} : vector<2x128xf32> to vector<2x32xf32>
    %40 = vector.extract_strided_slice %37 {offsets = [0, 64], sizes = [2, 32], strides = [1, 1]} : vector<2x128xf32> to vector<2x32xf32>
    %41 = vector.extract_strided_slice %36 {offsets = [0, 96], sizes = [2, 32], strides = [1, 1]} : vector<2x128xf32> to vector<2x32xf32>
    %42 = arith.mulf %39, %26 : vector<2x32xf32>
    %43 = arith.mulf %38, %40 : vector<2x32xf32>
    %44 = arith.addf %42, %43 : vector<2x32xf32>
    %45 = math.tanh %44 : vector<2x32xf32>
    %46 = arith.mulf %41, %45 : vector<2x32xf32>
    %47 = vector.extract_strided_slice %6 {offsets = [4, 0], sizes = [2, 128], strides = [1, 1]} : vector<16x128xf32> to vector<2x128xf32>
    %cst_15 = arith.constant dense<0.000000e+00> : vector<2x128xf32>
    %48 = tpu.matmul %46, %8, %cst_15 {dimension_numbers = #tpu.dot_dimension_numbers<[1], [0], [0], [1], [0, 0, 1, 1], [], []>} : vector<2x32xf32>, vector<32x128xf32>, vector<2x128xf32> -> vector<2x128xf32>
    %49 = arith.addf %47, %48 : vector<2x128xf32>
    %50 = arith.negf %49 : vector<2x128xf32>
    %51 = math.exp %50 : vector<2x128xf32>
    %cst_16 = arith.constant 1.000000e+00 : f32
    %52 = vector.broadcast %cst_16 : f32 to vector<2x128xf32>
    %53 = arith.addf %52, %51 : vector<2x128xf32>
    %54 = arith.divf %52, %53 : vector<2x128xf32>
    %55 = math.tanh %49 : vector<2x128xf32>
    %56 = vector.extract_strided_slice %54 {offsets = [0, 0], sizes = [2, 32], strides = [1, 1]} : vector<2x128xf32> to vector<2x32xf32>
    %57 = vector.extract_strided_slice %54 {offsets = [0, 32], sizes = [2, 32], strides = [1, 1]} : vector<2x128xf32> to vector<2x32xf32>
    %58 = vector.extract_strided_slice %55 {offsets = [0, 64], sizes = [2, 32], strides = [1, 1]} : vector<2x128xf32> to vector<2x32xf32>
    %59 = vector.extract_strided_slice %54 {offsets = [0, 96], sizes = [2, 32], strides = [1, 1]} : vector<2x128xf32> to vector<2x32xf32>
    %60 = arith.mulf %57, %44 : vector<2x32xf32>
    %61 = arith.mulf %56, %58 : vector<2x32xf32>
    %62 = arith.addf %60, %61 : vector<2x32xf32>
    %63 = math.tanh %62 : vector<2x32xf32>
    %64 = arith.mulf %59, %63 : vector<2x32xf32>
    %65 = vector.extract_strided_slice %6 {offsets = [6, 0], sizes = [2, 128], strides = [1, 1]} : vector<16x128xf32> to vector<2x128xf32>
    %cst_17 = arith.constant dense<0.000000e+00> : vector<2x128xf32>
    %66 = tpu.matmul %64, %8, %cst_17 {dimension_numbers = #tpu.dot_dimension_numbers<[1], [0], [0], [1], [0, 0, 1, 1], [], []>} : vector<2x32xf32>, vector<32x128xf32>, vector<2x128xf32> -> vector<2x128xf32>
    %67 = arith.addf %65, %66 : vector<2x128xf32>
    %68 = arith.negf %67 : vector<2x128xf32>
    %69 = math.exp %68 : vector<2x128xf32>
    %cst_18 = arith.constant 1.000000e+00 : f32
    %70 = vector.broadcast %cst_18 : f32 to vector<2x128xf32>
    %71 = arith.addf %70, %69 : vector<2x128xf32>
    %72 = arith.divf %70, %71 : vector<2x128xf32>
    %73 = math.tanh %67 : vector<2x128xf32>
    %74 = vector.extract_strided_slice %72 {offsets = [0, 0], sizes = [2, 32], strides = [1, 1]} : vector<2x128xf32> to vector<2x32xf32>
    %75 = vector.extract_strided_slice %72 {offsets = [0, 32], sizes = [2, 32], strides = [1, 1]} : vector<2x128xf32> to vector<2x32xf32>
    %76 = vector.extract_strided_slice %73 {offsets = [0, 64], sizes = [2, 32], strides = [1, 1]} : vector<2x128xf32> to vector<2x32xf32>
    %77 = vector.extract_strided_slice %72 {offsets = [0, 96], sizes = [2, 32], strides = [1, 1]} : vector<2x128xf32> to vector<2x32xf32>
    %78 = arith.mulf %75, %62 : vector<2x32xf32>
    %79 = arith.mulf %74, %76 : vector<2x32xf32>
    %80 = arith.addf %78, %79 : vector<2x32xf32>
    %81 = math.tanh %80 : vector<2x32xf32>
    %82 = arith.mulf %77, %81 : vector<2x32xf32>
    %83 = vector.extract_strided_slice %6 {offsets = [8, 0], sizes = [2, 128], strides = [1, 1]} : vector<16x128xf32> to vector<2x128xf32>
    %cst_19 = arith.constant dense<0.000000e+00> : vector<2x128xf32>
    %84 = tpu.matmul %82, %8, %cst_19 {dimension_numbers = #tpu.dot_dimension_numbers<[1], [0], [0], [1], [0, 0, 1, 1], [], []>} : vector<2x32xf32>, vector<32x128xf32>, vector<2x128xf32> -> vector<2x128xf32>
    %85 = arith.addf %83, %84 : vector<2x128xf32>
    %86 = arith.negf %85 : vector<2x128xf32>
    %87 = math.exp %86 : vector<2x128xf32>
    %cst_20 = arith.constant 1.000000e+00 : f32
    %88 = vector.broadcast %cst_20 : f32 to vector<2x128xf32>
    %89 = arith.addf %88, %87 : vector<2x128xf32>
    %90 = arith.divf %88, %89 : vector<2x128xf32>
    %91 = math.tanh %85 : vector<2x128xf32>
    %92 = vector.extract_strided_slice %90 {offsets = [0, 0], sizes = [2, 32], strides = [1, 1]} : vector<2x128xf32> to vector<2x32xf32>
    %93 = vector.extract_strided_slice %90 {offsets = [0, 32], sizes = [2, 32], strides = [1, 1]} : vector<2x128xf32> to vector<2x32xf32>
    %94 = vector.extract_strided_slice %91 {offsets = [0, 64], sizes = [2, 32], strides = [1, 1]} : vector<2x128xf32> to vector<2x32xf32>
    %95 = vector.extract_strided_slice %90 {offsets = [0, 96], sizes = [2, 32], strides = [1, 1]} : vector<2x128xf32> to vector<2x32xf32>
    %96 = arith.mulf %93, %80 : vector<2x32xf32>
    %97 = arith.mulf %92, %94 : vector<2x32xf32>
    %98 = arith.addf %96, %97 : vector<2x32xf32>
    %99 = math.tanh %98 : vector<2x32xf32>
    %100 = arith.mulf %95, %99 : vector<2x32xf32>
    %101 = vector.extract_strided_slice %6 {offsets = [10, 0], sizes = [2, 128], strides = [1, 1]} : vector<16x128xf32> to vector<2x128xf32>
    %cst_21 = arith.constant dense<0.000000e+00> : vector<2x128xf32>
    %102 = tpu.matmul %100, %8, %cst_21 {dimension_numbers = #tpu.dot_dimension_numbers<[1], [0], [0], [1], [0, 0, 1, 1], [], []>} : vector<2x32xf32>, vector<32x128xf32>, vector<2x128xf32> -> vector<2x128xf32>
    %103 = arith.addf %101, %102 : vector<2x128xf32>
    %104 = arith.negf %103 : vector<2x128xf32>
    %105 = math.exp %104 : vector<2x128xf32>
    %cst_22 = arith.constant 1.000000e+00 : f32
    %106 = vector.broadcast %cst_22 : f32 to vector<2x128xf32>
    %107 = arith.addf %106, %105 : vector<2x128xf32>
    %108 = arith.divf %106, %107 : vector<2x128xf32>
    %109 = math.tanh %103 : vector<2x128xf32>
    %110 = vector.extract_strided_slice %108 {offsets = [0, 0], sizes = [2, 32], strides = [1, 1]} : vector<2x128xf32> to vector<2x32xf32>
    %111 = vector.extract_strided_slice %108 {offsets = [0, 32], sizes = [2, 32], strides = [1, 1]} : vector<2x128xf32> to vector<2x32xf32>
    %112 = vector.extract_strided_slice %109 {offsets = [0, 64], sizes = [2, 32], strides = [1, 1]} : vector<2x128xf32> to vector<2x32xf32>
    %113 = vector.extract_strided_slice %108 {offsets = [0, 96], sizes = [2, 32], strides = [1, 1]} : vector<2x128xf32> to vector<2x32xf32>
    %114 = arith.mulf %111, %98 : vector<2x32xf32>
    %115 = arith.mulf %110, %112 : vector<2x32xf32>
    %116 = arith.addf %114, %115 : vector<2x32xf32>
    %117 = math.tanh %116 : vector<2x32xf32>
    %118 = arith.mulf %113, %117 : vector<2x32xf32>
    %119 = vector.extract_strided_slice %6 {offsets = [12, 0], sizes = [2, 128], strides = [1, 1]} : vector<16x128xf32> to vector<2x128xf32>
    %cst_23 = arith.constant dense<0.000000e+00> : vector<2x128xf32>
    %120 = tpu.matmul %118, %8, %cst_23 {dimension_numbers = #tpu.dot_dimension_numbers<[1], [0], [0], [1], [0, 0, 1, 1], [], []>} : vector<2x32xf32>, vector<32x128xf32>, vector<2x128xf32> -> vector<2x128xf32>
    %121 = arith.addf %119, %120 : vector<2x128xf32>
    %122 = arith.negf %121 : vector<2x128xf32>
    %123 = math.exp %122 : vector<2x128xf32>
    %cst_24 = arith.constant 1.000000e+00 : f32
    %124 = vector.broadcast %cst_24 : f32 to vector<2x128xf32>
    %125 = arith.addf %124, %123 : vector<2x128xf32>
    %126 = arith.divf %124, %125 : vector<2x128xf32>
    %127 = math.tanh %121 : vector<2x128xf32>
    %128 = vector.extract_strided_slice %126 {offsets = [0, 0], sizes = [2, 32], strides = [1, 1]} : vector<2x128xf32> to vector<2x32xf32>
    %129 = vector.extract_strided_slice %126 {offsets = [0, 32], sizes = [2, 32], strides = [1, 1]} : vector<2x128xf32> to vector<2x32xf32>
    %130 = vector.extract_strided_slice %127 {offsets = [0, 64], sizes = [2, 32], strides = [1, 1]} : vector<2x128xf32> to vector<2x32xf32>
    %131 = vector.extract_strided_slice %126 {offsets = [0, 96], sizes = [2, 32], strides = [1, 1]} : vector<2x128xf32> to vector<2x32xf32>
    %132 = arith.mulf %129, %116 : vector<2x32xf32>
    %133 = arith.mulf %128, %130 : vector<2x32xf32>
    %134 = arith.addf %132, %133 : vector<2x32xf32>
    %135 = math.tanh %134 : vector<2x32xf32>
    %136 = arith.mulf %131, %135 : vector<2x32xf32>
    %137 = vector.extract_strided_slice %6 {offsets = [14, 0], sizes = [2, 128], strides = [1, 1]} : vector<16x128xf32> to vector<2x128xf32>
    %cst_25 = arith.constant dense<0.000000e+00> : vector<2x128xf32>
    %138 = tpu.matmul %136, %8, %cst_25 {dimension_numbers = #tpu.dot_dimension_numbers<[1], [0], [0], [1], [0, 0, 1, 1], [], []>} : vector<2x32xf32>, vector<32x128xf32>, vector<2x128xf32> -> vector<2x128xf32>
    %139 = arith.addf %137, %138 : vector<2x128xf32>
    %140 = arith.negf %139 : vector<2x128xf32>
    %141 = math.exp %140 : vector<2x128xf32>
    %cst_26 = arith.constant 1.000000e+00 : f32
    %142 = vector.broadcast %cst_26 : f32 to vector<2x128xf32>
    %143 = arith.addf %142, %141 : vector<2x128xf32>
    %144 = arith.divf %142, %143 : vector<2x128xf32>
    %145 = math.tanh %139 : vector<2x128xf32>
    %146 = vector.extract_strided_slice %144 {offsets = [0, 0], sizes = [2, 32], strides = [1, 1]} : vector<2x128xf32> to vector<2x32xf32>
    %147 = vector.extract_strided_slice %144 {offsets = [0, 32], sizes = [2, 32], strides = [1, 1]} : vector<2x128xf32> to vector<2x32xf32>
    %148 = vector.extract_strided_slice %145 {offsets = [0, 64], sizes = [2, 32], strides = [1, 1]} : vector<2x128xf32> to vector<2x32xf32>
    %149 = vector.extract_strided_slice %144 {offsets = [0, 96], sizes = [2, 32], strides = [1, 1]} : vector<2x128xf32> to vector<2x32xf32>
    %150 = arith.mulf %147, %134 : vector<2x32xf32>
    %151 = arith.mulf %146, %148 : vector<2x32xf32>
    %152 = arith.addf %150, %151 : vector<2x32xf32>
    %153 = math.tanh %152 : vector<2x32xf32>
    %154 = arith.mulf %149, %153 : vector<2x32xf32>
    %155 = tpu.concatenate %28, %46, %64, %82, %100, %118, %136, %154 in 0 : vector<2x32xf32>, vector<2x32xf32>, vector<2x32xf32>, vector<2x32xf32>, vector<2x32xf32>, vector<2x32xf32>, vector<2x32xf32>, vector<2x32xf32> -> vector<16x32xf32>
    %c0_27 = arith.constant 0 : index
    %c0_28 = arith.constant 0 : index
    %c0_29 = arith.constant 0 : index
    %156 = vector.load %arg2[%c0_27, %c0_28, %c0_29] : memref<1x32x128xf32, #tpu.memory_space<vmem>>, vector<1x32x128xf32>
    %157 = vector.shape_cast %156 : vector<1x32x128xf32> to vector<32x128xf32>
    %c1 = arith.constant 1 : index
    %c0_30 = arith.constant 0 : index
    %c0_31 = arith.constant 0 : index
    %158 = vector.load %arg4[%c1, %c0_30, %c0_31] : memref<2x1x128xf32, #tpu.memory_space<vmem>>, vector<1x1x128xf32>
    %159 = vector.shape_cast %158 : vector<1x1x128xf32> to vector<1x128xf32>
    %cst_32 = arith.constant dense<0.000000e+00> : vector<16x128xf32>
    %160 = tpu.matmul %155, %157, %cst_32 {dimension_numbers = #tpu.dot_dimension_numbers<[1], [0], [0], [1], [0, 0, 1, 1], [], []>} : vector<16x32xf32>, vector<32x128xf32>, vector<16x128xf32> -> vector<16x128xf32>
    %161 = vector.broadcast %159 : vector<1x128xf32> to vector<16x128xf32>
    %162 = arith.addf %160, %161 : vector<16x128xf32>
    %c1_33 = arith.constant 1 : index
    %c0_34 = arith.constant 0 : index
    %c0_35 = arith.constant 0 : index
    %163 = vector.load %arg3[%c1_33, %c0_34, %c0_35] : memref<2x32x128xf32, #tpu.memory_space<vmem>>, vector<1x32x128xf32>
    %164 = vector.shape_cast %163 : vector<1x32x128xf32> to vector<32x128xf32>
    %cst_36 = arith.constant 0.000000e+00 : f32
    %165 = vector.broadcast %cst_36 : f32 to vector<2x32xf32>
    %cst_37 = arith.constant 0.000000e+00 : f32
    %166 = vector.broadcast %cst_37 : f32 to vector<2x32xf32>
    %167 = vector.extract_strided_slice %162 {offsets = [0, 0], sizes = [2, 128], strides = [1, 1]} : vector<16x128xf32> to vector<2x128xf32>
    %cst_38 = arith.constant dense<0.000000e+00> : vector<2x128xf32>
    %168 = tpu.matmul %165, %164, %cst_38 {dimension_numbers = #tpu.dot_dimension_numbers<[1], [0], [0], [1], [0, 0, 1, 1], [], []>} : vector<2x32xf32>, vector<32x128xf32>, vector<2x128xf32> -> vector<2x128xf32>
    %169 = arith.addf %167, %168 : vector<2x128xf32>
    %170 = arith.negf %169 : vector<2x128xf32>
    %171 = math.exp %170 : vector<2x128xf32>
    %cst_39 = arith.constant 1.000000e+00 : f32
    %172 = vector.broadcast %cst_39 : f32 to vector<2x128xf32>
    %173 = arith.addf %172, %171 : vector<2x128xf32>
    %174 = arith.divf %172, %173 : vector<2x128xf32>
    %175 = math.tanh %169 : vector<2x128xf32>
    %176 = vector.extract_strided_slice %174 {offsets = [0, 0], sizes = [2, 32], strides = [1, 1]} : vector<2x128xf32> to vector<2x32xf32>
    %177 = vector.extract_strided_slice %174 {offsets = [0, 32], sizes = [2, 32], strides = [1, 1]} : vector<2x128xf32> to vector<2x32xf32>
    %178 = vector.extract_strided_slice %175 {offsets = [0, 64], sizes = [2, 32], strides = [1, 1]} : vector<2x128xf32> to vector<2x32xf32>
    %179 = vector.extract_strided_slice %174 {offsets = [0, 96], sizes = [2, 32], strides = [1, 1]} : vector<2x128xf32> to vector<2x32xf32>
    %180 = arith.mulf %177, %166 : vector<2x32xf32>
    %181 = arith.mulf %176, %178 : vector<2x32xf32>
    %182 = arith.addf %180, %181 : vector<2x32xf32>
    %183 = math.tanh %182 : vector<2x32xf32>
    %184 = arith.mulf %179, %183 : vector<2x32xf32>
    %185 = vector.extract_strided_slice %162 {offsets = [2, 0], sizes = [2, 128], strides = [1, 1]} : vector<16x128xf32> to vector<2x128xf32>
    %cst_40 = arith.constant dense<0.000000e+00> : vector<2x128xf32>
    %186 = tpu.matmul %184, %164, %cst_40 {dimension_numbers = #tpu.dot_dimension_numbers<[1], [0], [0], [1], [0, 0, 1, 1], [], []>} : vector<2x32xf32>, vector<32x128xf32>, vector<2x128xf32> -> vector<2x128xf32>
    %187 = arith.addf %185, %186 : vector<2x128xf32>
    %188 = arith.negf %187 : vector<2x128xf32>
    %189 = math.exp %188 : vector<2x128xf32>
    %cst_41 = arith.constant 1.000000e+00 : f32
    %190 = vector.broadcast %cst_41 : f32 to vector<2x128xf32>
    %191 = arith.addf %190, %189 : vector<2x128xf32>
    %192 = arith.divf %190, %191 : vector<2x128xf32>
    %193 = math.tanh %187 : vector<2x128xf32>
    %194 = vector.extract_strided_slice %192 {offsets = [0, 0], sizes = [2, 32], strides = [1, 1]} : vector<2x128xf32> to vector<2x32xf32>
    %195 = vector.extract_strided_slice %192 {offsets = [0, 32], sizes = [2, 32], strides = [1, 1]} : vector<2x128xf32> to vector<2x32xf32>
    %196 = vector.extract_strided_slice %193 {offsets = [0, 64], sizes = [2, 32], strides = [1, 1]} : vector<2x128xf32> to vector<2x32xf32>
    %197 = vector.extract_strided_slice %192 {offsets = [0, 96], sizes = [2, 32], strides = [1, 1]} : vector<2x128xf32> to vector<2x32xf32>
    %198 = arith.mulf %195, %182 : vector<2x32xf32>
    %199 = arith.mulf %194, %196 : vector<2x32xf32>
    %200 = arith.addf %198, %199 : vector<2x32xf32>
    %201 = math.tanh %200 : vector<2x32xf32>
    %202 = arith.mulf %197, %201 : vector<2x32xf32>
    %203 = vector.extract_strided_slice %162 {offsets = [4, 0], sizes = [2, 128], strides = [1, 1]} : vector<16x128xf32> to vector<2x128xf32>
    %cst_42 = arith.constant dense<0.000000e+00> : vector<2x128xf32>
    %204 = tpu.matmul %202, %164, %cst_42 {dimension_numbers = #tpu.dot_dimension_numbers<[1], [0], [0], [1], [0, 0, 1, 1], [], []>} : vector<2x32xf32>, vector<32x128xf32>, vector<2x128xf32> -> vector<2x128xf32>
    %205 = arith.addf %203, %204 : vector<2x128xf32>
    %206 = arith.negf %205 : vector<2x128xf32>
    %207 = math.exp %206 : vector<2x128xf32>
    %cst_43 = arith.constant 1.000000e+00 : f32
    %208 = vector.broadcast %cst_43 : f32 to vector<2x128xf32>
    %209 = arith.addf %208, %207 : vector<2x128xf32>
    %210 = arith.divf %208, %209 : vector<2x128xf32>
    %211 = math.tanh %205 : vector<2x128xf32>
    %212 = vector.extract_strided_slice %210 {offsets = [0, 0], sizes = [2, 32], strides = [1, 1]} : vector<2x128xf32> to vector<2x32xf32>
    %213 = vector.extract_strided_slice %210 {offsets = [0, 32], sizes = [2, 32], strides = [1, 1]} : vector<2x128xf32> to vector<2x32xf32>
    %214 = vector.extract_strided_slice %211 {offsets = [0, 64], sizes = [2, 32], strides = [1, 1]} : vector<2x128xf32> to vector<2x32xf32>
    %215 = vector.extract_strided_slice %210 {offsets = [0, 96], sizes = [2, 32], strides = [1, 1]} : vector<2x128xf32> to vector<2x32xf32>
    %216 = arith.mulf %213, %200 : vector<2x32xf32>
    %217 = arith.mulf %212, %214 : vector<2x32xf32>
    %218 = arith.addf %216, %217 : vector<2x32xf32>
    %219 = math.tanh %218 : vector<2x32xf32>
    %220 = arith.mulf %215, %219 : vector<2x32xf32>
    %221 = vector.extract_strided_slice %162 {offsets = [6, 0], sizes = [2, 128], strides = [1, 1]} : vector<16x128xf32> to vector<2x128xf32>
    %cst_44 = arith.constant dense<0.000000e+00> : vector<2x128xf32>
    %222 = tpu.matmul %220, %164, %cst_44 {dimension_numbers = #tpu.dot_dimension_numbers<[1], [0], [0], [1], [0, 0, 1, 1], [], []>} : vector<2x32xf32>, vector<32x128xf32>, vector<2x128xf32> -> vector<2x128xf32>
    %223 = arith.addf %221, %222 : vector<2x128xf32>
    %224 = arith.negf %223 : vector<2x128xf32>
    %225 = math.exp %224 : vector<2x128xf32>
    %cst_45 = arith.constant 1.000000e+00 : f32
    %226 = vector.broadcast %cst_45 : f32 to vector<2x128xf32>
    %227 = arith.addf %226, %225 : vector<2x128xf32>
    %228 = arith.divf %226, %227 : vector<2x128xf32>
    %229 = math.tanh %223 : vector<2x128xf32>
    %230 = vector.extract_strided_slice %228 {offsets = [0, 0], sizes = [2, 32], strides = [1, 1]} : vector<2x128xf32> to vector<2x32xf32>
    %231 = vector.extract_strided_slice %228 {offsets = [0, 32], sizes = [2, 32], strides = [1, 1]} : vector<2x128xf32> to vector<2x32xf32>
    %232 = vector.extract_strided_slice %229 {offsets = [0, 64], sizes = [2, 32], strides = [1, 1]} : vector<2x128xf32> to vector<2x32xf32>
    %233 = vector.extract_strided_slice %228 {offsets = [0, 96], sizes = [2, 32], strides = [1, 1]} : vector<2x128xf32> to vector<2x32xf32>
    %234 = arith.mulf %231, %218 : vector<2x32xf32>
    %235 = arith.mulf %230, %232 : vector<2x32xf32>
    %236 = arith.addf %234, %235 : vector<2x32xf32>
    %237 = math.tanh %236 : vector<2x32xf32>
    %238 = arith.mulf %233, %237 : vector<2x32xf32>
    %239 = vector.extract_strided_slice %162 {offsets = [8, 0], sizes = [2, 128], strides = [1, 1]} : vector<16x128xf32> to vector<2x128xf32>
    %cst_46 = arith.constant dense<0.000000e+00> : vector<2x128xf32>
    %240 = tpu.matmul %238, %164, %cst_46 {dimension_numbers = #tpu.dot_dimension_numbers<[1], [0], [0], [1], [0, 0, 1, 1], [], []>} : vector<2x32xf32>, vector<32x128xf32>, vector<2x128xf32> -> vector<2x128xf32>
    %241 = arith.addf %239, %240 : vector<2x128xf32>
    %242 = arith.negf %241 : vector<2x128xf32>
    %243 = math.exp %242 : vector<2x128xf32>
    %cst_47 = arith.constant 1.000000e+00 : f32
    %244 = vector.broadcast %cst_47 : f32 to vector<2x128xf32>
    %245 = arith.addf %244, %243 : vector<2x128xf32>
    %246 = arith.divf %244, %245 : vector<2x128xf32>
    %247 = math.tanh %241 : vector<2x128xf32>
    %248 = vector.extract_strided_slice %246 {offsets = [0, 0], sizes = [2, 32], strides = [1, 1]} : vector<2x128xf32> to vector<2x32xf32>
    %249 = vector.extract_strided_slice %246 {offsets = [0, 32], sizes = [2, 32], strides = [1, 1]} : vector<2x128xf32> to vector<2x32xf32>
    %250 = vector.extract_strided_slice %247 {offsets = [0, 64], sizes = [2, 32], strides = [1, 1]} : vector<2x128xf32> to vector<2x32xf32>
    %251 = vector.extract_strided_slice %246 {offsets = [0, 96], sizes = [2, 32], strides = [1, 1]} : vector<2x128xf32> to vector<2x32xf32>
    %252 = arith.mulf %249, %236 : vector<2x32xf32>
    %253 = arith.mulf %248, %250 : vector<2x32xf32>
    %254 = arith.addf %252, %253 : vector<2x32xf32>
    %255 = math.tanh %254 : vector<2x32xf32>
    %256 = arith.mulf %251, %255 : vector<2x32xf32>
    %257 = vector.extract_strided_slice %162 {offsets = [10, 0], sizes = [2, 128], strides = [1, 1]} : vector<16x128xf32> to vector<2x128xf32>
    %cst_48 = arith.constant dense<0.000000e+00> : vector<2x128xf32>
    %258 = tpu.matmul %256, %164, %cst_48 {dimension_numbers = #tpu.dot_dimension_numbers<[1], [0], [0], [1], [0, 0, 1, 1], [], []>} : vector<2x32xf32>, vector<32x128xf32>, vector<2x128xf32> -> vector<2x128xf32>
    %259 = arith.addf %257, %258 : vector<2x128xf32>
    %260 = arith.negf %259 : vector<2x128xf32>
    %261 = math.exp %260 : vector<2x128xf32>
    %cst_49 = arith.constant 1.000000e+00 : f32
    %262 = vector.broadcast %cst_49 : f32 to vector<2x128xf32>
    %263 = arith.addf %262, %261 : vector<2x128xf32>
    %264 = arith.divf %262, %263 : vector<2x128xf32>
    %265 = math.tanh %259 : vector<2x128xf32>
    %266 = vector.extract_strided_slice %264 {offsets = [0, 0], sizes = [2, 32], strides = [1, 1]} : vector<2x128xf32> to vector<2x32xf32>
    %267 = vector.extract_strided_slice %264 {offsets = [0, 32], sizes = [2, 32], strides = [1, 1]} : vector<2x128xf32> to vector<2x32xf32>
    %268 = vector.extract_strided_slice %265 {offsets = [0, 64], sizes = [2, 32], strides = [1, 1]} : vector<2x128xf32> to vector<2x32xf32>
    %269 = vector.extract_strided_slice %264 {offsets = [0, 96], sizes = [2, 32], strides = [1, 1]} : vector<2x128xf32> to vector<2x32xf32>
    %270 = arith.mulf %267, %254 : vector<2x32xf32>
    %271 = arith.mulf %266, %268 : vector<2x32xf32>
    %272 = arith.addf %270, %271 : vector<2x32xf32>
    %273 = math.tanh %272 : vector<2x32xf32>
    %274 = arith.mulf %269, %273 : vector<2x32xf32>
    %275 = vector.extract_strided_slice %162 {offsets = [12, 0], sizes = [2, 128], strides = [1, 1]} : vector<16x128xf32> to vector<2x128xf32>
    %cst_50 = arith.constant dense<0.000000e+00> : vector<2x128xf32>
    %276 = tpu.matmul %274, %164, %cst_50 {dimension_numbers = #tpu.dot_dimension_numbers<[1], [0], [0], [1], [0, 0, 1, 1], [], []>} : vector<2x32xf32>, vector<32x128xf32>, vector<2x128xf32> -> vector<2x128xf32>
    %277 = arith.addf %275, %276 : vector<2x128xf32>
    %278 = arith.negf %277 : vector<2x128xf32>
    %279 = math.exp %278 : vector<2x128xf32>
    %cst_51 = arith.constant 1.000000e+00 : f32
    %280 = vector.broadcast %cst_51 : f32 to vector<2x128xf32>
    %281 = arith.addf %280, %279 : vector<2x128xf32>
    %282 = arith.divf %280, %281 : vector<2x128xf32>
    %283 = math.tanh %277 : vector<2x128xf32>
    %284 = vector.extract_strided_slice %282 {offsets = [0, 0], sizes = [2, 32], strides = [1, 1]} : vector<2x128xf32> to vector<2x32xf32>
    %285 = vector.extract_strided_slice %282 {offsets = [0, 32], sizes = [2, 32], strides = [1, 1]} : vector<2x128xf32> to vector<2x32xf32>
    %286 = vector.extract_strided_slice %283 {offsets = [0, 64], sizes = [2, 32], strides = [1, 1]} : vector<2x128xf32> to vector<2x32xf32>
    %287 = vector.extract_strided_slice %282 {offsets = [0, 96], sizes = [2, 32], strides = [1, 1]} : vector<2x128xf32> to vector<2x32xf32>
    %288 = arith.mulf %285, %272 : vector<2x32xf32>
    %289 = arith.mulf %284, %286 : vector<2x32xf32>
    %290 = arith.addf %288, %289 : vector<2x32xf32>
    %291 = math.tanh %290 : vector<2x32xf32>
    %292 = arith.mulf %287, %291 : vector<2x32xf32>
    %293 = vector.extract_strided_slice %162 {offsets = [14, 0], sizes = [2, 128], strides = [1, 1]} : vector<16x128xf32> to vector<2x128xf32>
    %cst_52 = arith.constant dense<0.000000e+00> : vector<2x128xf32>
    %294 = tpu.matmul %292, %164, %cst_52 {dimension_numbers = #tpu.dot_dimension_numbers<[1], [0], [0], [1], [0, 0, 1, 1], [], []>} : vector<2x32xf32>, vector<32x128xf32>, vector<2x128xf32> -> vector<2x128xf32>
    %295 = arith.addf %293, %294 : vector<2x128xf32>
    %296 = arith.negf %295 : vector<2x128xf32>
    %297 = math.exp %296 : vector<2x128xf32>
    %cst_53 = arith.constant 1.000000e+00 : f32
    %298 = vector.broadcast %cst_53 : f32 to vector<2x128xf32>
    %299 = arith.addf %298, %297 : vector<2x128xf32>
    %300 = arith.divf %298, %299 : vector<2x128xf32>
    %301 = math.tanh %295 : vector<2x128xf32>
    %302 = vector.extract_strided_slice %300 {offsets = [0, 0], sizes = [2, 32], strides = [1, 1]} : vector<2x128xf32> to vector<2x32xf32>
    %303 = vector.extract_strided_slice %300 {offsets = [0, 32], sizes = [2, 32], strides = [1, 1]} : vector<2x128xf32> to vector<2x32xf32>
    %304 = vector.extract_strided_slice %301 {offsets = [0, 64], sizes = [2, 32], strides = [1, 1]} : vector<2x128xf32> to vector<2x32xf32>
    %305 = vector.extract_strided_slice %300 {offsets = [0, 96], sizes = [2, 32], strides = [1, 1]} : vector<2x128xf32> to vector<2x32xf32>
    %306 = arith.mulf %303, %290 : vector<2x32xf32>
    %307 = arith.mulf %302, %304 : vector<2x32xf32>
    %308 = arith.addf %306, %307 : vector<2x32xf32>
    %309 = math.tanh %308 : vector<2x32xf32>
    %310 = arith.mulf %305, %309 : vector<2x32xf32>
    %c0_54 = arith.constant 0 : index
    %c0_55 = arith.constant 0 : index
    %311 = vector.load %arg5[%c0_54, %c0_55] : memref<1x32xf32, #tpu.memory_space<vmem>>, vector<1x32xf32>
    %312 = vector.broadcast %311 : vector<1x32xf32> to vector<2x32xf32>
    %313 = arith.mulf %310, %312 : vector<2x32xf32>
    %cst_56 = arith.constant dense<0.000000e+00> : vector<2xf32>
    %314 = vector.multi_reduction <add>, %313, %cst_56 [1] : vector<2x32xf32> to vector<2xf32>
    %315 = vector.shape_cast %314 : vector<2xf32> to vector<2x1xf32>
    %c0_57 = arith.constant 0 : index
    %c0_58 = arith.constant 0 : index
    %316 = vector.load %arg6[%c0_57, %c0_58] : memref<1x1xf32, #tpu.memory_space<vmem>>, vector<1x1xf32>
    %317 = vector.broadcast %316 : vector<1x1xf32> to vector<2x1xf32>
    %318 = arith.addf %315, %317 : vector<2x1xf32>
    %c0_59 = arith.constant 0 : index
    %c0_60 = arith.constant 0 : index
    %319 = vector.load %arg7[%c0_59, %c0_60] : memref<2x1xf32, #tpu.memory_space<vmem>>, vector<2x1xf32>
    tpu.vector_store %arg7[%c0_59, %c0_60], %318 {strides = array<i32>} : memref<2x1xf32, #tpu.memory_space<vmem>>, vector<2x1xf32>,
    return
  }
}

</mosaic_0001>

<bundles_post_ra>
// kernel: tpu_custom_call.1
= control target key start
LH: loop header
LB: loop body
LE: loop exit
PB: predicated region body
PF: predicated region fallthrough
CT: control target
= control target key end

     0   :  { %s1783_s0 = inlined_call_operand.vmem [shape: f32[16,4], index: 0, kind: input, shape index: {}]   ;;  %s1784_s1 = inlined_call_operand.vmem [shape: f32[4,128], index: 1, kind: input, shape index: {}]   ;;  %s1785_s2 = inlined_call_operand.hbm [shape: f32[1,32,128], index: 2, kind: input, shape index: {}]   ;;  %s1786_s3 = inlined_call_operand.hbm [shape: f32[2,32,128], index: 3, kind: input, shape index: {}]   ;;  %s1787_s4 = inlined_call_operand.vmem [shape: f32[2,1,128], index: 4, kind: input, shape index: {}]   ;;  %s1788_s5 = inlined_call_operand.vmem [shape: f32[1,32], index: 5, kind: input, shape index: {}]   ;;  %s1789_s6 = inlined_call_operand.<no memory space> [shape: f32[1,1], index: 6, kind: input, shape index: {}]   ;;  %s1790_s7 = inlined_call_operand.vmem [shape: f32[2,1], index: 7, kind: output, shape index: {}]  }
   0x1   :  { %v12_v0 = vstv %s1789_s6 }
   0x2   :  { %13 = vst [vmem:[#allocation2] sm:$0x1] %v12_v0 }
   0x3   :  { %14 = vsyncpa [#allocation4], 0  ;;  %s24_s28 = sshll.u32 %s1785_s2, 4  ;;  %s25_s28 = int_to_ptr.hbm [resolvable:$true] %s24_s28 }
   0x4   :  { %15 = vsyncpa [#allocation6], 0  ;;  %s1506_s29 = smov [#allocation3]   ;;  %s37_s10 = sshll.u32 %s1786_s3, 4  ;;  %s38_s10 = int_to_ptr.hbm [resolvable:$true] %s37_s10 }
   0x5   :  { %s26_s30 = sshll.u32 %s1506_s29, 4  ;;  %s1507_s11 = smov 128   ;;  %s27_s30 = int_to_ptr.vmem [resolvable:$true] %s26_s30 }
   0x6   :  { %s1508_s12 = smov 8   ;;  %s1509_s6 = smov [#allocation5]  }
   0x7   :  { %32 = dma.hbm_to_vmem [thread:$0]  %s25_s28, 512, %s27_s30, [#allocation4], %s1507_s11, %s1507_s11, %s1508_s12  }
   0x8   :  { %s39_s13 = sshll.u32 %s1509_s6, 4  ;;  %s40_s13 = int_to_ptr.vmem [resolvable:$true] %s39_s13 }
   0x9   :  { %45 = dma.hbm_to_vmem [thread:$0]  %s38_s10, 1024, %s40_s13, [#allocation6], %s1507_s11, %s1507_s11, %s1508_s12  }
   0xa   :  { %1502 = dma.done.wait [#allocation4], 512  }
   0xb   :  { %1503 = vsyncadd [#allocation4], 4294966784 }
   0xc   :  { %1504 = dma.done.wait [#allocation6], 1024  }
   0xd   :  { %1505 = vsyncadd [#allocation6], 4294966272  ;;  %vm74_vm0 = vcmask 1043456   ;;  %vm67_vm1 = vcmask 31744   ;;  %v104_v1 = vld [vmem:[#allocation5 + $0x18] sm:$0xff]  ;;  %v103_v2 = vld [vmem:[#allocation5 + $0x10] sm:$0xff] }
   0xe   :  { %v62_v3 = vld [vmem:[%s1784_s1] sm:$0xf]  ;;  %121 = vmatpush.msra.mxu1 %v104_v1  ;;  %v102_v5 = vld [vmem:[#allocation5 + $0x8] sm:$0xff]  ;;  %184 = vmatpush.msra.mxu2 %v104_v1  ;;  %v1510_v7 = vmov 0.0   ;;  %s1511_s17 = smov 64   ;;  %s1512_s18 = smov 32  }
   0xf   :  { %1278 = vmatpush.msk.msra.mxu0 %vm74_vm0, %v62_v3  ;;  %v60_v4 = vld [vmem:[%s1783_s0] sm:$0xff]  ;;  %254 = vmatpush.msra.mxu3 %v104_v1  ;;  %vm105_vm6 = vcmask 261120   ;;  %vm652_vm15 = vcmask 1041408   ;;  %s1513_s23 = smov 96  }
  0x10   :  { %1279 = vmatmul.msk.f32.vlgmr.msra.gmra.mxu0 %vm67_vm1, %v60_v4  ;;  %122 = vmatpush.msra.mxu1 %v103_v2  ;;  %v101_v6 = vld [vmem:[#allocation5] sm:$0xff]  ;;  %v1575_v8 = vld [vmem:[%s1787_s4] ss:$0 sm:$0xff] }
  0x11   :  { %185 = vmatpush.msra.mxu2 %v103_v2  ;;  %530 = vmatpush.msrb.mxu0 %v104_v1 }
  0x12   :  { %123 = vmatpush.msra.mxu1 %v102_v5  ;;  %255 = vmatpush.msra.mxu3 %v103_v2 }
  0x13   :  { %186 = vmatpush.msra.mxu2 %v102_v5  ;;  %531 = vmatpush.msrb.mxu0 %v103_v2 }
  0x14   :  { %124 = vmatpush.msra.mxu1 %v101_v6  ;;  %256 = vmatpush.msra.mxu3 %v102_v5 }
  0x15   :  { %125 = vmatmul.f32.vlgmr.msra.gmra.mxu1 %v1510_v7  ;;  %187 = vmatpush.msra.mxu2 %v101_v6 }
  0x16   :  { %257 = vmatpush.msra.mxu3 %v101_v6  ;;  %324 = vmatpush.msrb.mxu1 %v104_v1 }
  0x17   :  { %394 = vmatpush.msrb.mxu2 %v104_v1  ;;  %532 = vmatpush.msrb.mxu0 %v102_v5 }
  0x18   :  { %460 = vmatpush.msrb.mxu3 %v104_v1  ;;  %325 = vmatpush.msrb.mxu1 %v103_v2 }
  0x19   :  { %395 = vmatpush.msrb.mxu2 %v103_v2  ;;  %533 = vmatpush.msrb.mxu0 %v101_v6 }
  0x1a   :  { %461 = vmatpush.msrb.mxu3 %v103_v2  ;;  %326 = vmatpush.msrb.mxu1 %v102_v5 }
  0x1b   :  { %396 = vmatpush.msrb.mxu2 %v102_v5 }
  0x1c   :  { %462 = vmatpush.msrb.mxu3 %v102_v5  ;;  %327 = vmatpush.msrb.mxu1 %v101_v6 }
  0x1d   :  { %397 = vmatpush.msrb.mxu2 %v101_v6 }
  0x1e   :  { %463 = vmatpush.msrb.mxu3 %v101_v6  ;;  %600 = vmatpush.msra.mxu1 %v104_v1 }
  0x20   :  { %601 = vmatpush.msra.mxu1 %v103_v2 }
  0x22   :  { %602 = vmatpush.msra.mxu1 %v102_v5 }
  0x24   :  { %603 = vmatpush.msra.mxu1 %v101_v6 }
  0x8d   :  { %v95_v9 = vpop.f32.mrf.mxu0 }
  0x8e   :  { %v1578_v10 = vadd.f32 %v1575_v8, %v95_v9 }
  0x92   :  { %v126_v11 = vpop.f32.mrf.mxu1 }
  0x93   :  { %v129_v12 = vadd.f32 %v126_v11, %v1578_v10 }
  0x95   :  { %1326 = vtanh.f32 %v129_v12  ;;  %v1281_v14 = vmul.f32 -1.442695, %v129_v12 }
  0x97   :  { %1328 = vpow2.f32 %v1281_v14 }
  0x9b   :  { %v1327_v13 = vpop.eup %1326 }
  0x9c   :  { %152 = vrot.lane.b32.xlu0 %v1327_v13, %s1511_s17 }
  0x9d   :  { %v1329_v15 = vpop.eup %1328 }
  0x9e   :  { %v133_v16 = vadd.f32 1.0, %v1329_v15 }
  0xa0   :  { %1330 = vrcp.f32 %v133_v16  ;;  %v145_v22 = vand.u32 2147483648, %v133_v16  ;;  %vm139_vm3 = vweird.f32 %v133_v16  ;;  %v143_v23 = vand.u32 2147483647, %v133_v16 }
  0xa2   :  { %v146_v25 = vor.u32 1.1754944e-38, %v145_v22  ;;  %vm144_vm5 = vcmp.eq.f32.partialorder %v143_v23, 8.507059e+37 }
  0xa6   :  { %v1331_v17 = vpop.eup %1330 }
  0xa7   :  { %v135_v18 = vmul.f32 %v1331_v17, %v133_v16  ;;  %vm140_vm2 = vweird.f32 %v1331_v17 }
  0xa8   :  { %vm141_vm4 = vmor %vm139_vm3, %vm140_vm2 }
  0xa9   :  { %v136_v19 = vsub.f32 1.0, %v135_v18 }
  0xab   :  { %v137_v20 = vmul.f32 %v1331_v17, %v136_v19 }
  0xad   :  { %v138_v21 = vadd.f32 %v1331_v17, %v137_v20 }
  0xaf   :  { %v142_v24 = vsel %vm141_vm4, %v1331_v17, %v138_v21 }
  0xb0   :  { %v147_v27 = vsel %vm144_vm5, %v146_v25, %v142_v24 }
  0xb1   :  { %v150_v29 = vmul.f32 0.0, %v147_v27 }
 0x10e   :  { %v153_v26 = vpop.permute.xlu0 %152 }
 0x10f   :  { %v155_v28 = vmul.f32 %v153_v26, %v147_v27 }
 0x111   :  { %157 = vrot.lane.b32.xlu0 %v155_v28, %s1512_s18 }
 0x183   :  { %v158_v30 = vpop.permute.xlu0 %157 }
 0x184   :  { %v160_v31 = vadd.f32 %v158_v30, %v150_v29 }
 0x186   :  { %1332 = vtanh.f32 %v160_v31  ;;  %v217_v55 = vrot.slane %v160_v31, 6 }
 0x18c   :  { %v1333_v32 = vpop.eup %1332 }
 0x18d   :  { %163 = vrot.lane.b32.xlu1 %v1333_v32, %s1511_s17 }
 0x1ff   :  { %v164_v33 = vpop.permute.xlu1 %163 }
 0x200   :  { %v1584_v34 = vmul.f32 %v164_v33, %v147_v27 }
 0x202   :  { %168 = vrot.lane.b32.xlu1 %v1584_v34, %s1512_s18 }
 0x274   :  { %v169_v35 = vpop.permute.xlu1 %168 }
 0x275   :  { %1282 = vmatmul.msk.f32.vlgmr.msra.gmra.mxu2 %vm105_vm6, %v169_v35 }
 0x2f8   :  { %v189_v36 = vpop.f32.mrf.mxu2 }
 0x2f9   :  { %v193_v37 = vrot.slane %v189_v36, 6 }
 0x2fb   :  { %v195_v38 = vadd.f32 %v193_v37, %v1578_v10 }
 0x2fd   :  { %1334 = vtanh.f32 %v195_v38  ;;  %v1283_v40 = vmul.f32 -1.442695, %v195_v38 }
 0x2ff   :  { %1336 = vpow2.f32 %v1283_v40 }
 0x303   :  { %v1335_v39 = vpop.eup %1334 }
 0x304   :  { %221 = vrot.lane.b32.xlu2 %v1335_v39, %s1511_s17 }
 0x305   :  { %v1337_v41 = vpop.eup %1336 }
 0x306   :  { %v199_v42 = vadd.f32 1.0, %v1337_v41 }
 0x308   :  { %1338 = vrcp.f32 %v199_v42  ;;  %v211_v48 = vand.u32 2147483648, %v199_v42  ;;  %vm205_vm8 = vweird.f32 %v199_v42  ;;  %v209_v49 = vand.u32 2147483647, %v199_v42 }
 0x30a   :  { %v212_v51 = vor.u32 1.1754944e-38, %v211_v48  ;;  %vm210_vm10 = vcmp.eq.f32.partialorder %v209_v49, 8.507059e+37 }
 0x30e   :  { %v1339_v43 = vpop.eup %1338 }
 0x30f   :  { %v201_v44 = vmul.f32 %v1339_v43, %v199_v42  ;;  %vm206_vm7 = vweird.f32 %v1339_v43 }
 0x310   :  { %vm207_vm9 = vmor %vm205_vm8, %vm206_vm7  ;;  %vm655_vm7 = vcmask 1045504  }
 0x311   :  { %v202_v45 = vsub.f32 1.0, %v201_v44 }
 0x313   :  { %v203_v46 = vmul.f32 %v1339_v43, %v202_v45 }
 0x315   :  { %v204_v47 = vadd.f32 %v1339_v43, %v203_v46 }
 0x317   :  { %v208_v50 = vsel %vm207_vm9, %v1339_v43, %v204_v47 }
 0x318   :  { %v213_v53 = vsel %vm210_vm10, %v212_v51, %v208_v50 }
 0x319   :  { %v219_v56 = vmul.f32 %v217_v55, %v213_v53 }
 0x35e   :  { %v222_v52 = vpop.permute.xlu2 %221 }
 0x35f   :  { %v224_v54 = vmul.f32 %v222_v52, %v213_v53 }
 0x361   :  { %226 = vrot.lane.b32.xlu2 %v224_v54, %s1512_s18 }
 0x3bb   :  { %v227_v57 = vpop.permute.xlu2 %226 }
 0x3bc   :  { %v229_v58 = vadd.f32 %v227_v57, %v219_v56 }
 0x3be   :  { %1340 = vtanh.f32 %v229_v58  ;;  %v287_v22 = vrot.slane %v229_v58, 6 }
 0x3c4   :  { %v1341_v59 = vpop.eup %1340 }
 0x3c5   :  { %232 = vrot.lane.b32.xlu0 %v1341_v59, %s1511_s17 }
 0x437   :  { %v233_v60 = vpop.permute.xlu0 %232 }
 0x438   :  { %v235_v61 = vmul.f32 %v233_v60, %v213_v53  ;;  %v61_v60 = vld [vmem:[%s1783_s0 + $0x8] sm:$0xff] }
 0x439   :  { %1280 = vmatmul.msk.f32.gmra.mxu0 %vm67_vm1, %v61_v60 }
 0x43a   :  { %v237_v62 = vrot.slane %v235_v61, 2  ;;  %v653_v29 = vsel %vm652_vm15, %v1584_v34, %v235_v61 }
 0x43c   :  { %238 = vrot.lane.b32.xlu1 %v237_v62, %s1512_s18 }
 0x4ae   :  { %v239_v63 = vpop.permute.xlu1 %238 }
 0x4af   :  { %1284 = vmatmul.msk.f32.vlgmr.msra.gmra.mxu3 %vm105_vm6, %v239_v63 }
 0x4b6   :  { %v98_v62 = vpop.f32.mrf.mxu0 }
 0x4b7   :  { %v1616_v63 = vadd.f32 %v1575_v8, %v98_v62 }
 0x532   :  { %v259_v0 = vpop.f32.mrf.mxu3 }
 0x533   :  { %v263_v1 = vrot.slane %v259_v0, 4 }
 0x535   :  { %v265_v2 = vadd.f32 %v263_v1, %v1578_v10 }
 0x537   :  { %1342 = vtanh.f32 %v265_v2  ;;  %v1285_v4 = vmul.f32 -1.442695, %v265_v2 }
 0x539   :  { %1344 = vpow2.f32 %v1285_v4 }
 0x53d   :  { %v1343_v3 = vpop.eup %1342 }
 0x53e   :  { %291 = vrot.lane.b32.xlu2 %v1343_v3, %s1511_s17 }
 0x53f   :  { %v1345_v5 = vpop.eup %1344 }
 0x540   :  { %v269_v6 = vadd.f32 1.0, %v1345_v5 }
 0x542   :  { %1346 = vrcp.f32 %v269_v6  ;;  %v281_v15 = vand.u32 2147483648, %v269_v6  ;;  %vm275_vm12 = vweird.f32 %v269_v6  ;;  %v279_v16 = vand.u32 2147483647, %v269_v6 }
 0x544   :  { %v282_v18 = vor.u32 1.1754944e-38, %v281_v15  ;;  %vm280_vm14 = vcmp.eq.f32.partialorder %v279_v16, 8.507059e+37 }
 0x548   :  { %v1347_v9 = vpop.eup %1346 }
 0x549   :  { %v271_v11 = vmul.f32 %v1347_v9, %v269_v6  ;;  %vm276_vm11 = vweird.f32 %v1347_v9 }
 0x54a   :  { %vm277_vm13 = vmor %vm275_vm12, %vm276_vm11 }
 0x54b   :  { %v272_v12 = vsub.f32 1.0, %v271_v11 }
 0x54d   :  { %v273_v13 = vmul.f32 %v1347_v9, %v272_v12 }
 0x54f   :  { %v274_v14 = vadd.f32 %v1347_v9, %v273_v13 }
 0x551   :  { %v278_v17 = vsel %vm277_vm13, %v1347_v9, %v274_v14 }
 0x552   :  { %v283_v20 = vsel %vm280_vm14, %v282_v18, %v278_v17 }
 0x553   :  { %v289_v23 = vmul.f32 %v287_v22, %v283_v20  ;;  %v661_v22 = vld [vmem:[#allocation3 + $0x8] sm:$0xff] }
 0x598   :  { %v292_v19 = vpop.permute.xlu2 %291 }
 0x599   :  { %v294_v21 = vmul.f32 %v292_v19, %v283_v20 }
 0x59b   :  { %296 = vrot.lane.b32.xlu0 %v294_v21, %s1512_s18  ;;  %v662_v21 = vld [vmem:[#allocation3 + $0x10] sm:$0xff] }
 0x60d   :  { %v297_v24 = vpop.permute.xlu0 %296 }
 0x60e   :  { %v299_v25 = vadd.f32 %v297_v24, %v289_v23  ;;  %v660_v23 = vld [vmem:[#allocation3] sm:$0xff] }
 0x610   :  { %1348 = vtanh.f32 %v299_v25  ;;  %v357_v51 = vrot.slane %v299_v25, 6 }
 0x616   :  { %v1349_v26 = vpop.eup %1348 }
 0x617   :  { %302 = vrot.lane.b32.xlu1 %v1349_v26, %s1511_s17 }
 0x689   :  { %v303_v27 = vpop.permute.xlu1 %302 }
 0x68a   :  { %v305_v28 = vmul.f32 %v303_v27, %v283_v20  ;;  %v663_v20 = vld [vmem:[#allocation3 + $0x18] sm:$0xff] }
 0x68b   :  { %691 = vmatpush.msra.mxu2 %v663_v20 }
 0x68c   :  { %v307_v30 = vrot.slane %v305_v28, 4  ;;  %v654_v31 = vsel %vm74_vm0, %v653_v29, %v305_v28 }
 0x68d   :  { %692 = vmatpush.msra.mxu2 %v662_v21 }
 0x68e   :  { %308 = vrot.lane.b32.xlu2 %v307_v30, %s1512_s18 }
 0x68f   :  { %693 = vmatpush.msra.mxu2 %v661_v22 }
 0x691   :  { %694 = vmatpush.msra.mxu2 %v660_v23 }
 0x6e8   :  { %v309_v32 = vpop.permute.xlu2 %308 }
 0x6e9   :  { %1286 = vmatmul.msk.f32.vlgmr.msrb.gmra.mxu1 %vm105_vm6, %v309_v32  ;;  %v1631_v32 = vld [vmem:[#allocation5 + $0x38] sm:$0xff] }
 0x6ea   :  { %719 = vmatpush.msra.mxu3 %v1631_v32  ;;  %782 = vmatpush.msra.mxu0 %v1631_v32 }
 0x6eb   :  { %852 = vmatpush.msrb.mxu1 %v1631_v32 }
 0x766   :  { %v329_v33 = vpop.f32.mrf.mxu1 }
 0x767   :  { %v333_v35 = vrot.slane %v329_v33, 2  ;;  %v1633_v33 = vld [vmem:[#allocation5 + $0x30] sm:$0xff] }
 0x768   :  { %720 = vmatpush.msra.mxu3 %v1633_v33  ;;  %783 = vmatpush.msra.mxu0 %v1633_v33 }
 0x769   :  { %v335_v36 = vadd.f32 %v333_v35, %v1578_v10  ;;  %v1637_v35 = vld [vmem:[#allocation5 + $0x28] sm:$0xff]  ;;  %853 = vmatpush.msrb.mxu1 %v1633_v33 }
 0x76a   :  { %721 = vmatpush.msra.mxu3 %v1637_v35  ;;  %784 = vmatpush.msra.mxu0 %v1637_v35 }
 0x76b   :  { %1350 = vtanh.f32 %v335_v36  ;;  %v1287_v38 = vmul.f32 -1.442695, %v335_v36  ;;  %v1643_v36 = vld [vmem:[#allocation5 + $0x20] sm:$0xff]  ;;  %854 = vmatpush.msrb.mxu1 %v1637_v35 }
 0x76c   :  { %722 = vmatpush.msra.mxu3 %v1643_v36  ;;  %785 = vmatpush.msra.mxu0 %v1643_v36 }
 0x76d   :  { %1352 = vpow2.f32 %v1287_v38  ;;  %855 = vmatpush.msrb.mxu1 %v1643_v36 }
 0x771   :  { %v1351_v37 = vpop.eup %1350 }
 0x772   :  { %361 = vrot.lane.b32.xlu0 %v1351_v37, %s1511_s17 }
 0x773   :  { %v1353_v39 = vpop.eup %1352 }
 0x774   :  { %v339_v34 = vadd.f32 1.0, %v1353_v39 }
 0x776   :  { %1354 = vrcp.f32 %v339_v34  ;;  %v351_v45 = vand.u32 2147483648, %v339_v34  ;;  %vm345_vm3 = vweird.f32 %v339_v34  ;;  %v349_v46 = vand.u32 2147483647, %v339_v34 }
 0x778   :  { %v352_v47 = vor.u32 1.1754944e-38, %v351_v45  ;;  %vm350_vm5 = vcmp.eq.f32.partialorder %v349_v46, 8.507059e+37 }
 0x77c   :  { %v1355_v40 = vpop.eup %1354 }
 0x77d   :  { %v341_v41 = vmul.f32 %v1355_v40, %v339_v34  ;;  %vm346_vm2 = vweird.f32 %v1355_v40  ;;  %v1668_v34 = vld [vmem:[%s1787_s4 + $0x1] ss:$0 sm:$0xff] }
 0x77e   :  { %vm347_vm4 = vmor %vm345_vm3, %vm346_vm2 }
 0x77f   :  { %v342_v42 = vsub.f32 1.0, %v341_v41 }
 0x781   :  { %v343_v43 = vmul.f32 %v1355_v40, %v342_v42 }
 0x783   :  { %v344_v44 = vadd.f32 %v1355_v40, %v343_v43 }
 0x785   :  { %v348_v10 = vsel %vm347_vm4, %v1355_v40, %v344_v44 }
 0x786   :  { %v353_v49 = vsel %vm350_vm5, %v352_v47, %v348_v10 }
 0x787   :  { %v359_v52 = vmul.f32 %v357_v51, %v353_v49 }
 0x7e4   :  { %v362_v48 = vpop.permute.xlu0 %361 }
 0x7e5   :  { %v364_v50 = vmul.f32 %v362_v48, %v353_v49 }
 0x7e7   :  { %366 = vrot.lane.b32.xlu1 %v364_v50, %s1512_s18 }
 0x859   :  { %v367_v53 = vpop.permute.xlu1 %366 }
 0x85a   :  { %v369_v54 = vadd.f32 %v367_v53, %v359_v52 }
 0x85c   :  { %1356 = vtanh.f32 %v369_v54  ;;  %v424_v24 = vrot.slane %v369_v54, 6 }
 0x862   :  { %v1357_v55 = vpop.eup %1356 }
 0x863   :  { %372 = vrot.lane.b32.xlu2 %v1357_v55, %s1511_s17 }
 0x8bd   :  { %v373_v56 = vpop.permute.xlu2 %372 }
 0x8be   :  { %v375_v57 = vmul.f32 %v373_v56, %v353_v49 }
 0x8c0   :  { %v377_v58 = vrot.slane %v375_v57, 6  ;;  %v656_v59 = vsel %vm655_vm7, %v654_v31, %v375_v57 }
 0x8c2   :  { %378 = vrot.lane.b32.xlu0 %v377_v58, %s1512_s18 }
 0x934   :  { %v379_v61 = vpop.permute.xlu0 %378 }
 0x935   :  { %1288 = vmatmul.msk.f32.vlgmr.msrb.gmra.mxu2 %vm105_vm6, %v379_v61 }
 0x936   :  { %1128 = vmatpush.msrb.mxu2 %v1631_v32 }
 0x938   :  { %1129 = vmatpush.msrb.mxu2 %v1633_v33 }
 0x93a   :  { %1130 = vmatpush.msrb.mxu2 %v1637_v35 }
 0x93c   :  { %1131 = vmatpush.msrb.mxu2 %v1643_v36 }
 0x9b8   :  { %v399_v0 = vpop.f32.mrf.mxu2 }
 0x9b9   :  { %v402_v1 = vadd.f32 %v399_v0, %v1616_v63 }
 0x9bb   :  { %1358 = vtanh.f32 %v402_v1  ;;  %v1289_v3 = vmul.f32 -1.442695, %v402_v1 }
 0x9bd   :  { %1360 = vpow2.f32 %v1289_v3 }
 0x9c1   :  { %v1359_v2 = vpop.eup %1358 }
 0x9c2   :  { %428 = vrot.lane.b32.xlu1 %v1359_v2, %s1511_s17 }
 0x9c3   :  { %v1361_v4 = vpop.eup %1360 }
 0x9c4   :  { %v406_v5 = vadd.f32 1.0, %v1361_v4 }
 0x9c6   :  { %1362 = vrcp.f32 %v406_v5  ;;  %v418_v8 = vand.u32 2147483648, %v406_v5  ;;  %vm412_vm8 = vweird.f32 %v406_v5  ;;  %v416_v14 = vand.u32 2147483647, %v406_v5 }
 0x9c8   :  { %v419_v16 = vor.u32 1.1754944e-38, %v418_v8  ;;  %vm417_vm10 = vcmp.eq.f32.partialorder %v416_v14, 8.507059e+37 }
 0x9cc   :  { %v1363_v6 = vpop.eup %1362 }
 0x9cd   :  { %v408_v9 = vmul.f32 %v1363_v6, %v406_v5  ;;  %vm413_vm1 = vweird.f32 %v1363_v6 }
 0x9ce   :  { %vm414_vm9 = vmor %vm412_vm8, %vm413_vm1 }
 0x9cf   :  { %v409_v11 = vsub.f32 1.0, %v408_v9 }
 0x9d1   :  { %v410_v12 = vmul.f32 %v1363_v6, %v409_v11 }
 0x9d3   :  { %v411_v13 = vadd.f32 %v1363_v6, %v410_v12 }
 0x9d5   :  { %v415_v15 = vsel %vm414_vm9, %v1363_v6, %v411_v13 }
 0x9d6   :  { %v420_v18 = vsel %vm417_vm10, %v419_v16, %v415_v15 }
 0x9d7   :  { %v426_v25 = vmul.f32 %v424_v24, %v420_v18 }
 0xa34   :  { %v429_v17 = vpop.permute.xlu1 %428 }
 0xa35   :  { %v431_v19 = vmul.f32 %v429_v17, %v420_v18 }
 0xa37   :  { %433 = vrot.lane.b32.xlu2 %v431_v19, %s1512_s18 }
 0xa3f   :  { %671 = vrot.lane.b32.xlu2 %v656_v59, %s1512_s18 }
 0xa91   :  { %v434_v26 = vpop.permute.xlu2 %433 }
 0xa92   :  { %v1622_v27 = vadd.f32 %v434_v26, %v426_v25 }
 0xa94   :  { %1364 = vtanh.f32 %v1622_v27  ;;  %v493_v14 = vrot.slane %v1622_v27, 6 }
 0xa99   :  { %v672_v28 = vpop.permute.xlu2 %671 }
 0xa9a   :  { %v1365_v29 = vpop.eup %1364  ;;  %1297 = vmatmul.msk.f32.vlgmr.msra.gmra.mxu2 %vm105_vm6, %v672_v28 }
 0xa9b   :  { %439 = vrot.lane.b32.xlu0 %v1365_v29, %s1511_s17 }
 0xb0d   :  { %v440_v30 = vpop.permute.xlu0 %439 }
 0xb0e   :  { %v1627_v31 = vmul.f32 %v440_v30, %v420_v18 }
 0xb10   :  { %444 = vrot.lane.b32.xlu1 %v1627_v31, %s1512_s18 }
 0xb1d   :  { %v696_v41 = vpop.f32.mrf.mxu2 }
 0xb82   :  { %v445_v37 = vpop.permute.xlu1 %444 }
 0xb83   :  { %1290 = vmatmul.msk.f32.vlgmr.msrb.gmra.mxu3 %vm105_vm6, %v445_v37 }
 0xb84   :  { %922 = vmatpush.msrb.mxu3 %v1631_v32 }
 0xb86   :  { %923 = vmatpush.msrb.mxu3 %v1633_v33 }
 0xb88   :  { %924 = vmatpush.msrb.mxu3 %v1637_v35 }
 0xb8a   :  { %925 = vmatpush.msrb.mxu3 %v1643_v36 }
 0xb8b   :  { %723 = vmatmul.f32.vlgmr.msra.gmra.mxu3 %v1510_v7  ;;  %v1672_v7 = vadd.f32 %v1668_v34, %v696_v41 }
 0xb8c   :  { %1198 = vmatpush.msra.mxu3 %v1631_v32 }
 0xb8e   :  { %1199 = vmatpush.msra.mxu3 %v1633_v33 }
 0xb90   :  { %1200 = vmatpush.msra.mxu3 %v1637_v35 }
 0xb92   :  { %1201 = vmatpush.msra.mxu3 %v1643_v36 }
 0xc06   :  { %v465_v38 = vpop.f32.mrf.mxu3 }
 0xc07   :  { %v469_v39 = vrot.slane %v465_v38, 6 }
 0xc09   :  { %v471_v40 = vadd.f32 %v469_v39, %v1616_v63 }
 0xc0b   :  { %1366 = vtanh.f32 %v471_v40  ;;  %v1291_v46 = vmul.f32 -1.442695, %v471_v40 }
 0xc0e   :  { %v724_v42 = vpop.f32.mrf.mxu3 }
 0xc0f   :  { %v727_v43 = vadd.f32 %v724_v42, %v1672_v7 }
 0xc11   :  { %v1367_v44 = vpop.eup %1366  ;;  %1368 = vtanh.f32 %v727_v43  ;;  %v1299_v10 = vmul.f32 -1.442695, %v727_v43 }
 0xc12   :  { %497 = vrot.lane.b32.xlu0 %v1367_v44, %s1511_s17  ;;  %1370 = vpow2.f32 %v1291_v46 }
 0xc13   :  { %1372 = vpow2.f32 %v1299_v10 }
 0xc17   :  { %v1369_v45 = vpop.eup %1368 }
 0xc18   :  { %750 = vrot.lane.b32.xlu1 %v1369_v45, %s1511_s17  ;;  %v1371_v47 = vpop.eup %1370 }
 0xc19   :  { %v475_v48 = vadd.f32 1.0, %v1371_v47  ;;  %v1373_v49 = vpop.eup %1372 }
 0xc1a   :  { %v731_v50 = vadd.f32 1.0, %v1373_v49 }
 0xc1b   :  { %1374 = vrcp.f32 %v475_v48  ;;  %v487_v59 = vand.u32 2147483648, %v475_v48  ;;  %vm481_vm12 = vweird.f32 %v475_v48  ;;  %v485_v60 = vand.u32 2147483647, %v475_v48 }
 0xc1c   :  { %1376 = vrcp.f32 %v731_v50  ;;  %v743_v4 = vand.u32 2147483648, %v731_v50  ;;  %vm737_vm3 = vweird.f32 %v731_v50  ;;  %v741_v6 = vand.u32 2147483647, %v731_v50 }
 0xc1d   :  { %v488_v0 = vor.u32 1.1754944e-38, %v487_v59  ;;  %vm486_vm14 = vcmp.eq.f32.partialorder %v485_v60, 8.507059e+37 }
 0xc1e   :  { %v744_v11 = vor.u32 1.1754944e-38, %v743_v4  ;;  %vm742_vm5 = vcmp.eq.f32.partialorder %v741_v6, 8.507059e+37 }
 0xc21   :  { %v1375_v51 = vpop.eup %1374 }
 0xc22   :  { %v477_v52 = vmul.f32 %v1375_v51, %v475_v48  ;;  %v1377_v53 = vpop.eup %1376  ;;  %vm482_vm11 = vweird.f32 %v1375_v51 }
 0xc23   :  { %v733_v55 = vmul.f32 %v1377_v53, %v731_v50  ;;  %vm483_vm13 = vmor %vm481_vm12, %vm482_vm11  ;;  %vm738_vm2 = vweird.f32 %v1377_v53 }
 0xc24   :  { %v478_v54 = vsub.f32 1.0, %v477_v52  ;;  %vm739_vm4 = vmor %vm737_vm3, %vm738_vm2 }
 0xc25   :  { %v734_v57 = vsub.f32 1.0, %v733_v55 }
 0xc26   :  { %v479_v56 = vmul.f32 %v1375_v51, %v478_v54 }
 0xc27   :  { %v735_v61 = vmul.f32 %v1377_v53, %v734_v57 }
 0xc28   :  { %v480_v58 = vadd.f32 %v1375_v51, %v479_v56 }
 0xc29   :  { %v736_v1 = vadd.f32 %v1377_v53, %v735_v61 }
 0xc2a   :  { %v484_v62 = vsel %vm483_vm13, %v1375_v51, %v480_v58 }
 0xc2b   :  { %v489_v3 = vsel %vm486_vm14, %v488_v0, %v484_v62  ;;  %v740_v9 = vsel %vm739_vm4, %v1377_v53, %v736_v1 }
 0xc2c   :  { %v745_v13 = vsel %vm742_vm5, %v744_v11, %v740_v9  ;;  %v495_v15 = vmul.f32 %v493_v14, %v489_v3 }
 0xc2d   :  { %v748_v19 = vmul.f32 0.0, %v745_v13 }
 0xc84   :  { %v498_v2 = vpop.permute.xlu0 %497 }
 0xc85   :  { %v500_v5 = vmul.f32 %v498_v2, %v489_v3 }
 0xc87   :  { %502 = vrot.lane.b32.xlu2 %v500_v5, %s1512_s18 }
 0xc8a   :  { %v751_v12 = vpop.permute.xlu1 %750 }
 0xc8b   :  { %v753_v8 = vmul.f32 %v751_v12, %v745_v13 }
 0xc8d   :  { %755 = vrot.lane.b32.xlu0 %v753_v8, %s1512_s18 }
 0xce1   :  { %v503_v16 = vpop.permute.xlu2 %502 }
 0xce2   :  { %v1680_v17 = vadd.f32 %v503_v16, %v495_v15 }
 0xce4   :  { %1378 = vtanh.f32 %v1680_v17 }
 0xcea   :  { %v1379_v18 = vpop.eup %1378 }
 0xceb   :  { %508 = vrot.lane.b32.xlu1 %v1379_v18, %s1511_s17 }
 0xcff   :  { %v756_v20 = vpop.permute.xlu0 %755 }
 0xd00   :  { %v1684_v21 = vadd.f32 %v756_v20, %v748_v19 }
 0xd02   :  { %1380 = vtanh.f32 %v1684_v21  ;;  %v815_v16 = vrot.slane %v1684_v21, 6 }
 0xd08   :  { %v1381_v22 = vpop.eup %1380 }
 0xd09   :  { %761 = vrot.lane.b32.xlu2 %v1381_v22, %s1511_s17 }
 0xd5d   :  { %v509_v23 = vpop.permute.xlu1 %508 }
 0xd5e   :  { %v1688_v24 = vmul.f32 %v509_v23, %v489_v3 }
 0xd60   :  { %v513_v25 = vrot.slane %v1688_v24, 2 }
 0xd62   :  { %514 = vrot.lane.b32.xlu0 %v513_v25, %s1512_s18 }
 0xd63   :  { %v762_v26 = vpop.permute.xlu2 %761 }
 0xd64   :  { %v764_v27 = vmul.f32 %v762_v26, %v745_v13  ;;  %v563_v13 = vrot.slane %v1680_v17, 6  ;;  %v657_v26 = vsel %vm652_vm15, %v1627_v31, %v1688_v24 }
 0xd66   :  { %766 = vrot.lane.b32.xlu1 %v764_v27, %s1512_s18 }
 0xdd4   :  { %v515_v28 = vpop.permute.xlu0 %514 }
 0xdd5   :  { %1292 = vmatmul.msk.f32.vlgmr.msrb.gmra.mxu0 %vm105_vm6, %v515_v28 }
 0xdd6   :  { %992 = vmatpush.msrb.mxu0 %v1631_v32 }
 0xdd8   :  { %993 = vmatpush.msrb.mxu0 %v1633_v33  ;;  %v767_v29 = vpop.permute.xlu1 %766 }
 0xdda   :  { %994 = vmatpush.msrb.mxu0 %v1637_v35 }
 0xddc   :  { %995 = vmatpush.msrb.mxu0 %v1643_v36 }
 0xddd   :  { %1300 = vmatmul.msk.f32.vlgmr.msra.gmra.mxu0 %vm105_vm6, %v767_v29 }
 0xe52   :  { %v535_v30 = vpop.f32.mrf.mxu0 }
 0xe53   :  { %v539_v37 = vrot.slane %v535_v30, 4 }
 0xe55   :  { %v541_v38 = vadd.f32 %v539_v37, %v1616_v63 }
 0xe57   :  { %1382 = vtanh.f32 %v541_v38  ;;  %v1293_v44 = vmul.f32 -1.442695, %v541_v38 }
 0xe5a   :  { %v787_v39 = vpop.f32.mrf.mxu0 }
 0xe5b   :  { %v791_v40 = vrot.slane %v787_v39, 6 }
 0xe5d   :  { %v1383_v41 = vpop.eup %1382  ;;  %v793_v42 = vadd.f32 %v791_v40, %v1672_v7 }
 0xe5e   :  { %567 = vrot.lane.b32.xlu2 %v1383_v41, %s1511_s17 }
 0xe5f   :  { %1384 = vtanh.f32 %v793_v42  ;;  %v1301_v49 = vmul.f32 -1.442695, %v793_v42 }
 0xe60   :  { %1386 = vpow2.f32 %v1293_v44 }
 0xe65   :  { %v1385_v43 = vpop.eup %1384 }
 0xe66   :  { %819 = vrot.lane.b32.xlu0 %v1385_v43, %s1511_s17  ;;  %v1387_v45 = vpop.eup %1386 }
 0xe67   :  { %v545_v46 = vadd.f32 1.0, %v1387_v45 }
 0xe69   :  { %1388 = vrcp.f32 %v545_v46  ;;  %v557_v52 = vand.u32 2147483648, %v545_v46  ;;  %vm551_vm8 = vweird.f32 %v545_v46  ;;  %v555_v53 = vand.u32 2147483647, %v545_v46 }
 0xe6a   :  { %1390 = vpow2.f32 %v1301_v49 }
 0xe6b   :  { %v558_v56 = vor.u32 1.1754944e-38, %v557_v52  ;;  %vm556_vm10 = vcmp.eq.f32.partialorder %v555_v53, 8.507059e+37 }
 0xe6f   :  { %v1389_v10 = vpop.eup %1388 }
 0xe70   :  { %v547_v47 = vmul.f32 %v1389_v10, %v545_v46  ;;  %vm552_vm1 = vweird.f32 %v1389_v10  ;;  %v1391_v54 = vpop.eup %1390 }
 0xe71   :  { %vm553_vm9 = vmor %vm551_vm8, %vm552_vm1  ;;  %v797_v57 = vadd.f32 1.0, %v1391_v54 }
 0xe72   :  { %v548_v48 = vsub.f32 1.0, %v547_v47 }
 0xe73   :  { %1392 = vrcp.f32 %v797_v57  ;;  %v809_v3 = vand.u32 2147483648, %v797_v57  ;;  %vm803_vm12 = vweird.f32 %v797_v57  ;;  %v807_v4 = vand.u32 2147483647, %v797_v57 }
 0xe74   :  { %v549_v50 = vmul.f32 %v1389_v10, %v548_v48 }
 0xe75   :  { %v810_v6 = vor.u32 1.1754944e-38, %v809_v3  ;;  %vm808_vm14 = vcmp.eq.f32.partialorder %v807_v4, 8.507059e+37 }
 0xe76   :  { %v550_v51 = vadd.f32 %v1389_v10, %v549_v50 }
 0xe78   :  { %v554_v55 = vsel %vm553_vm9, %v1389_v10, %v550_v51 }
 0xe79   :  { %v559_v59 = vsel %vm556_vm10, %v558_v56, %v554_v55  ;;  %v1393_v61 = vpop.eup %1392 }
 0xe7a   :  { %v799_v62 = vmul.f32 %v1393_v61, %v797_v57  ;;  %vm804_vm11 = vweird.f32 %v1393_v61  ;;  %v565_v8 = vmul.f32 %v563_v13, %v559_v59 }
 0xe7b   :  { %vm805_vm13 = vmor %vm803_vm12, %vm804_vm11 }
 0xe7c   :  { %v800_v0 = vsub.f32 1.0, %v799_v62 }
 0xe7e   :  { %v801_v1 = vmul.f32 %v1393_v61, %v800_v0 }
 0xe80   :  { %v802_v2 = vadd.f32 %v1393_v61, %v801_v1 }
 0xe82   :  { %v806_v5 = vsel %vm805_vm13, %v1393_v61, %v802_v2 }
 0xe83   :  { %v811_v11 = vsel %vm808_vm14, %v810_v6, %v806_v5 }
 0xe84   :  { %v817_v18 = vmul.f32 %v815_v16, %v811_v11 }
 0xeb8   :  { %v568_v58 = vpop.permute.xlu2 %567 }
 0xeb9   :  { %v570_v60 = vmul.f32 %v568_v58, %v559_v59 }
 0xebb   :  { %572 = vrot.lane.b32.xlu1 %v570_v60, %s1512_s18 }
 0xed8   :  { %v820_v9 = vpop.permute.xlu0 %819 }
 0xed9   :  { %v822_v12 = vmul.f32 %v820_v9, %v811_v11 }
 0xedb   :  { %824 = vrot.lane.b32.xlu2 %v822_v12, %s1512_s18 }
 0xf2d   :  { %v573_v14 = vpop.permute.xlu1 %572 }
 0xf2e   :  { %v1706_v15 = vadd.f32 %v573_v14, %v565_v8 }
 0xf30   :  { %1394 = vtanh.f32 %v1706_v15 }
 0xf35   :  { %v825_v19 = vpop.permute.xlu2 %824 }
 0xf36   :  { %v1395_v20 = vpop.eup %1394  ;;  %v827_v22 = vadd.f32 %v825_v19, %v817_v18 }
 0xf37   :  { %578 = vrot.lane.b32.xlu0 %v1395_v20, %s1511_s17 }
 0xf38   :  { %1396 = vtanh.f32 %v827_v22  ;;  %v885_v55 = vrot.slane %v827_v22, 6 }
 0xf3e   :  { %v1397_v23 = vpop.eup %1396 }
 0xf3f   :  { %830 = vrot.lane.b32.xlu1 %v1397_v23, %s1511_s17  ;;  %v633_v23 = vrot.slane %v1706_v15, 6 }
 0xfa9   :  { %v579_v25 = vpop.permute.xlu0 %578 }
 0xfaa   :  { %v581_v17 = vmul.f32 %v579_v25, %v559_v59 }
 0xfac   :  { %v583_v27 = vrot.slane %v581_v17, 4  ;;  %v1716_v28 = vsel %vm74_vm0, %v657_v26, %v581_v17 }
 0xfae   :  { %584 = vrot.lane.b32.xlu2 %v583_v27, %s1512_s18 }
 0xfb1   :  { %v831_v21 = vpop.permute.xlu1 %830 }
 0xfb2   :  { %v833_v29 = vmul.f32 %v831_v21, %v811_v11 }
 0xfb4   :  { %v835_v30 = vrot.slane %v833_v29, 2 }
 0xfb6   :  { %836 = vrot.lane.b32.xlu0 %v835_v30, %s1512_s18 }
0x1008   :  { %v585_v37 = vpop.permute.xlu2 %584 }
0x1009   :  { %1294 = vmatmul.msk.f32.vlgmr.msra.gmra.mxu1 %vm105_vm6, %v585_v37 }
0x100a   :  { %1058 = vmatpush.msra.mxu1 %v1631_v32 }
0x100c   :  { %1059 = vmatpush.msra.mxu1 %v1633_v33 }
0x100e   :  { %1060 = vmatpush.msra.mxu1 %v1637_v35 }
0x1010   :  { %1061 = vmatpush.msra.mxu1 %v1643_v36 }
0x1028   :  { %v837_v31 = vpop.permute.xlu0 %836 }
0x1029   :  { %1302 = vmatmul.msk.f32.vlgmr.msrb.gmra.mxu1 %vm105_vm6, %v837_v31 }
0x1086   :  { %v605_v24 = vpop.f32.mrf.mxu1 }
0x1087   :  { %v609_v47 = vrot.slane %v605_v24, 2 }
0x1089   :  { %v611_v50 = vadd.f32 %v609_v47, %v1616_v63 }
0x108b   :  { %v1295_v63 = vmul.f32 -1.442695, %v611_v50 }
0x10a6   :  { %v857_v38 = vpop.f32.mrf.mxu1 }
0x10a7   :  { %v861_v39 = vrot.slane %v857_v38, 4 }
0x10a9   :  { %v863_v40 = vadd.f32 %v861_v39, %v1672_v7 }
0x10ab   :  { %1398 = vtanh.f32 %v863_v40  ;;  %v1303_v42 = vmul.f32 -1.442695, %v863_v40 }
0x10ad   :  { %1400 = vpow2.f32 %v1303_v42 }
0x10b1   :  { %v1399_v41 = vpop.eup %1398 }
0x10b2   :  { %889 = vrot.lane.b32.xlu1 %v1399_v41, %s1511_s17 }
0x10b3   :  { %v1401_v32 = vpop.eup %1400 }
0x10b4   :  { %v867_v33 = vadd.f32 1.0, %v1401_v32 }
0x10b6   :  { %1402 = vrcp.f32 %v867_v33  ;;  %v879_v46 = vand.u32 2147483648, %v867_v33  ;;  %vm873_vm15 = vweird.f32 %v867_v33  ;;  %v877_v10 = vand.u32 2147483647, %v867_v33 }
0x10b7   :  { %1404 = vtanh.f32 %v611_v50 }
0x10b8   :  { %v880_v49 = vor.u32 1.1754944e-38, %v879_v46  ;;  %vm878_vm3 = vcmp.eq.f32.partialorder %v877_v10, 8.507059e+37 }
0x10bc   :  { %v1403_v35 = vpop.eup %1402 }
0x10bd   :  { %v869_v43 = vmul.f32 %v1403_v35, %v867_v33  ;;  %vm874_vm0 = vweird.f32 %v1403_v35  ;;  %v1405_v54 = vpop.eup %1404 }
0x10be   :  { %vm875_vm2 = vmor %vm873_vm15, %vm874_vm0 }
0x10bf   :  { %v870_v36 = vsub.f32 1.0, %v869_v43 }
0x10c1   :  { %v871_v44 = vmul.f32 %v1403_v35, %v870_v36 }
0x10c3   :  { %v872_v45 = vadd.f32 %v1403_v35, %v871_v44 }
0x10c5   :  { %v876_v48 = vsel %vm875_vm2, %v1403_v35, %v872_v45 }
0x10c6   :  { %v881_v52 = vsel %vm878_vm3, %v880_v49, %v876_v48 }
0x10c7   :  { %v887_v56 = vmul.f32 %v885_v55, %v881_v52 }
0x1124   :  { %v890_v51 = vpop.permute.xlu1 %889 }
0x1125   :  { %v892_v53 = vmul.f32 %v890_v51, %v881_v52 }
0x1127   :  { %894 = vrot.lane.b32.xlu2 %v892_v53, %s1512_s18 }
0x112f   :  { %637 = vrot.lane.b32.xlu2 %v1405_v54, %s1511_s17 }
0x1181   :  { %v895_v57 = vpop.permute.xlu2 %894 }
0x1182   :  { %v1731_v58 = vadd.f32 %v895_v57, %v887_v56 }
0x1184   :  { %1406 = vtanh.f32 %v1731_v58  ;;  %v955_v45 = vrot.slane %v1731_v58, 6 }
0x1185   :  { %1408 = vpow2.f32 %v1295_v63 }
0x1189   :  { %v638_v8 = vpop.permute.xlu2 %637 }
0x118a   :  { %v1407_v59 = vpop.eup %1406 }
0x118b   :  { %900 = vrot.lane.b32.xlu0 %v1407_v59, %s1511_s17  ;;  %v1409_v60 = vpop.eup %1408 }
0x118c   :  { %v615_v61 = vadd.f32 1.0, %v1409_v60 }
0x118e   :  { %1410 = vrcp.f32 %v615_v61  ;;  %v627_v9 = vand.u32 2147483648, %v615_v61  ;;  %vm621_vm5 = vweird.f32 %v615_v61  ;;  %v625_v11 = vand.u32 2147483647, %v615_v61 }
0x1190   :  { %v628_v13 = vor.u32 1.1754944e-38, %v627_v9  ;;  %vm626_vm8 = vcmp.eq.f32.partialorder %v625_v11, 8.507059e+37 }
0x1194   :  { %v1411_v62 = vpop.eup %1410 }
0x1195   :  { %v617_v0 = vmul.f32 %v1411_v62, %v615_v61  ;;  %vm622_vm4 = vweird.f32 %v1411_v62 }
0x1196   :  { %vm623_vm1 = vmor %vm621_vm5, %vm622_vm4 }
0x1197   :  { %v618_v1 = vsub.f32 1.0, %v617_v0 }
0x1199   :  { %v619_v2 = vmul.f32 %v1411_v62, %v618_v1 }
0x119b   :  { %v620_v5 = vadd.f32 %v1411_v62, %v619_v2 }
0x119d   :  { %v624_v12 = vsel %vm623_vm1, %v1411_v62, %v620_v5 }
0x119e   :  { %v629_v14 = vsel %vm626_vm8, %v628_v13, %v624_v12 }
0x119f   :  { %v640_v16 = vmul.f32 %v638_v8, %v629_v14  ;;  %v635_v17 = vmul.f32 %v633_v23, %v629_v14 }
0x11fd   :  { %v901_v3 = vpop.permute.xlu0 %900 }
0x11fe   :  { %v903_v4 = vmul.f32 %v901_v3, %v881_v52 }
0x1200   :  { %v905_v6 = vrot.slane %v903_v4, 4 }
0x1202   :  { %906 = vrot.lane.b32.xlu1 %v905_v6, %s1512_s18 }
0x120a   :  { %642 = vrot.lane.b32.xlu1 %v640_v16, %s1512_s18 }
0x1274   :  { %v907_v18 = vpop.permute.xlu1 %906 }
0x1275   :  { %1304 = vmatmul.msk.f32.vlgmr.msrb.gmra.mxu3 %vm105_vm6, %v907_v18 }
0x127c   :  { %v643_v25 = vpop.permute.xlu1 %642 }
0x127d   :  { %v645_v26 = vadd.f32 %v643_v25, %v635_v17 }
0x12f8   :  { %v927_v19 = vpop.f32.mrf.mxu3 }
0x12f9   :  { %v931_v20 = vrot.slane %v927_v19, 2 }
0x12fb   :  { %v933_v22 = vadd.f32 %v931_v20, %v1672_v7 }
0x12fd   :  { %1412 = vtanh.f32 %v933_v22  ;;  %v1305_v29 = vmul.f32 -1.442695, %v933_v22 }
0x12fe   :  { %1414 = vtanh.f32 %v645_v26 }
0x12ff   :  { %1416 = vpow2.f32 %v1305_v29 }
0x1303   :  { %v1413_v27 = vpop.eup %1412 }
0x1304   :  { %959 = vrot.lane.b32.xlu0 %v1413_v27, %s1511_s17  ;;  %v1415_v21 = vpop.eup %1414 }
0x1305   :  { %v1417_v30 = vpop.eup %1416 }
0x1306   :  { %v937_v37 = vadd.f32 1.0, %v1417_v30 }
0x1308   :  { %1418 = vrcp.f32 %v937_v37  ;;  %v949_v39 = vand.u32 2147483648, %v937_v37  ;;  %vm943_vm10 = vweird.f32 %v937_v37  ;;  %v947_v40 = vand.u32 2147483647, %v937_v37 }
0x130a   :  { %v950_v42 = vor.u32 1.1754944e-38, %v949_v39  ;;  %vm948_vm12 = vcmp.eq.f32.partialorder %v947_v40, 8.507059e+37 }
0x130c   :  { %648 = vrot.lane.b32.xlu0 %v1415_v21, %s1511_s17 }
0x130e   :  { %v1419_v31 = vpop.eup %1418 }
0x130f   :  { %v939_v7 = vmul.f32 %v1419_v31, %v937_v37  ;;  %vm944_vm9 = vweird.f32 %v1419_v31 }
0x1310   :  { %vm945_vm11 = vmor %vm943_vm10, %vm944_vm9 }
0x1311   :  { %v940_v24 = vsub.f32 1.0, %v939_v7 }
0x1313   :  { %v941_v15 = vmul.f32 %v1419_v31, %v940_v24 }
0x1315   :  { %v942_v38 = vadd.f32 %v1419_v31, %v941_v15 }
0x1317   :  { %v946_v41 = vsel %vm945_vm11, %v1419_v31, %v942_v38 }
0x1318   :  { %v951_v33 = vsel %vm948_vm12, %v950_v42, %v946_v41 }
0x1319   :  { %v957_v46 = vmul.f32 %v955_v45, %v951_v33 }
0x1376   :  { %v960_v32 = vpop.permute.xlu0 %959 }
0x1377   :  { %v962_v35 = vmul.f32 %v960_v32, %v951_v33 }
0x1379   :  { %964 = vrot.lane.b32.xlu2 %v962_v35, %s1512_s18 }
0x137e   :  { %v649_v43 = vpop.permute.xlu0 %648 }
0x137f   :  { %v651_v36 = vmul.f32 %v649_v43, %v629_v14 }
0x1381   :  { %v659_v44 = vsel %vm655_vm7, %v1716_v28, %v651_v36 }
0x1382   :  { %673 = vrot.lane.b32.xlu2 %v659_v44, %s1512_s18 }
0x13d3   :  { %v965_v10 = vpop.permute.xlu2 %964 }
0x13d4   :  { %v967_v47 = vadd.f32 %v965_v10, %v957_v46 }
0x13d6   :  { %1420 = vtanh.f32 %v967_v47  ;;  %v1022_v11 = vrot.slane %v967_v47, 6 }
0x13dc   :  { %v1421_v48 = vpop.eup %1420  ;;  %v674_v49 = vpop.permute.xlu2 %673 }
0x13dd   :  { %970 = vrot.lane.b32.xlu1 %v1421_v48, %s1511_s17  ;;  %1298 = vmatmul.msk.f32.gmra.mxu2 %vm105_vm6, %v674_v49 }
0x144f   :  { %v971_v50 = vpop.permute.xlu1 %970 }
0x1450   :  { %v973_v51 = vmul.f32 %v971_v50, %v951_v33 }
0x1452   :  { %v975_v52 = vrot.slane %v973_v51, 6 }
0x1454   :  { %976 = vrot.lane.b32.xlu0 %v975_v52, %s1512_s18 }
0x1460   :  { %v699_v53 = vpop.f32.mrf.mxu2 }
0x1461   :  { %v1752_v54 = vadd.f32 %v1668_v34, %v699_v53 }
0x14c6   :  { %v977_v28 = vpop.permute.xlu0 %976 }
0x14c7   :  { %1306 = vmatmul.msk.f32.vlgmr.msrb.gmra.mxu0 %vm105_vm6, %v977_v28 }
0x1544   :  { %v997_v55 = vpop.f32.mrf.mxu0 }
0x1545   :  { %v1000_v56 = vadd.f32 %v997_v55, %v1752_v54 }
0x1547   :  { %1422 = vtanh.f32 %v1000_v56  ;;  %v1307_v58 = vmul.f32 -1.442695, %v1000_v56 }
0x1549   :  { %1424 = vpow2.f32 %v1307_v58 }
0x154d   :  { %v1423_v57 = vpop.eup %1422 }
0x154e   :  { %1026 = vrot.lane.b32.xlu1 %v1423_v57, %s1511_s17 }
0x154f   :  { %v1425_v59 = vpop.eup %1424 }
0x1550   :  { %v1004_v63 = vadd.f32 1.0, %v1425_v59 }
0x1552   :  { %1426 = vrcp.f32 %v1004_v63  ;;  %v1016_v34 = vand.u32 2147483648, %v1004_v63  ;;  %vm1010_vm13 = vweird.f32 %v1004_v63  ;;  %v1014_v2 = vand.u32 2147483647, %v1004_v63 }
0x1554   :  { %v1017_v4 = vor.u32 1.1754944e-38, %v1016_v34  ;;  %vm1015_vm0 = vcmp.eq.f32.partialorder %v1014_v2, 8.507059e+37 }
0x1558   :  { %v1427_v60 = vpop.eup %1426 }
0x1559   :  { %v1006_v61 = vmul.f32 %v1427_v60, %v1004_v63  ;;  %vm1011_vm7 = vweird.f32 %v1427_v60 }
0x155a   :  { %vm1012_vm14 = vmor %vm1010_vm13, %vm1011_vm7  ;;  %vm1261_vm7 = vcmask 261126   ;;  %vm1270_vm13 = vcmask 7174  }
0x155b   :  { %v1007_v62 = vsub.f32 1.0, %v1006_v61 }
0x155d   :  { %v1008_v0 = vmul.f32 %v1427_v60, %v1007_v62 }
0x155f   :  { %v1009_v1 = vadd.f32 %v1427_v60, %v1008_v0 }
0x1561   :  { %v1013_v3 = vsel %vm1012_vm14, %v1427_v60, %v1009_v1 }
0x1562   :  { %v1018_v6 = vsel %vm1015_vm0, %v1017_v4, %v1013_v3 }
0x1563   :  { %v1024_v12 = vmul.f32 %v1022_v11, %v1018_v6 }
0x15c0   :  { %v1027_v5 = vpop.permute.xlu1 %1026 }
0x15c1   :  { %v1029_v9 = vmul.f32 %v1027_v5, %v1018_v6 }
0x15c3   :  { %1031 = vrot.lane.b32.xlu2 %v1029_v9, %s1512_s18 }
0x161d   :  { %v1032_v13 = vpop.permute.xlu2 %1031 }
0x161e   :  { %v1034_v8 = vadd.f32 %v1032_v13, %v1024_v12 }
0x1620   :  { %1428 = vtanh.f32 %v1034_v8  ;;  %v1091_v42 = vrot.slane %v1034_v8, 6 }
0x1626   :  { %v1429_v14 = vpop.eup %1428 }
0x1627   :  { %1037 = vrot.lane.b32.xlu0 %v1429_v14, %s1511_s17 }
0x1699   :  { %v1038_v16 = vpop.permute.xlu0 %1037 }
0x169a   :  { %v1040_v18 = vmul.f32 %v1038_v16, %v1018_v6 }
0x169c   :  { %1042 = vrot.lane.b32.xlu1 %v1040_v18, %s1512_s18 }
0x170e   :  { %v1043_v19 = vpop.permute.xlu1 %1042 }
0x170f   :  { %1308 = vmatmul.msk.f32.vlgmr.msra.gmra.mxu1 %vm105_vm6, %v1043_v19 }
0x178c   :  { %v1063_v20 = vpop.f32.mrf.mxu1 }
0x178d   :  { %v1067_v22 = vrot.slane %v1063_v20, 6 }
0x178f   :  { %v1069_v23 = vadd.f32 %v1067_v22, %v1752_v54 }
0x1791   :  { %1430 = vtanh.f32 %v1069_v23  ;;  %v1309_v17 = vmul.f32 -1.442695, %v1069_v23 }
0x1793   :  { %1432 = vpow2.f32 %v1309_v17 }
0x1797   :  { %v1431_v25 = vpop.eup %1430 }
0x1798   :  { %1095 = vrot.lane.b32.xlu2 %v1431_v25, %s1511_s17 }
0x1799   :  { %v1433_v26 = vpop.eup %1432 }
0x179a   :  { %v1073_v27 = vadd.f32 1.0, %v1433_v26 }
0x179c   :  { %1434 = vrcp.f32 %v1073_v27  ;;  %v1085_v7 = vand.u32 2147483648, %v1073_v27  ;;  %vm1079_vm2 = vweird.f32 %v1073_v27  ;;  %v1083_v24 = vand.u32 2147483647, %v1073_v27 }
0x179e   :  { %v1086_v38 = vor.u32 1.1754944e-38, %v1085_v7  ;;  %vm1084_vm4 = vcmp.eq.f32.partialorder %v1083_v24, 8.507059e+37 }
0x17a2   :  { %v1435_v21 = vpop.eup %1434 }
0x17a3   :  { %v1075_v29 = vmul.f32 %v1435_v21, %v1073_v27  ;;  %vm1080_vm15 = vweird.f32 %v1435_v21 }
0x17a4   :  { %vm1081_vm3 = vmor %vm1079_vm2, %vm1080_vm15 }
0x17a5   :  { %v1076_v30 = vsub.f32 1.0, %v1075_v29 }
0x17a7   :  { %v1077_v37 = vmul.f32 %v1435_v21, %v1076_v30 }
0x17a9   :  { %v1078_v31 = vadd.f32 %v1435_v21, %v1077_v37 }
0x17ab   :  { %v1082_v15 = vsel %vm1081_vm3, %v1435_v21, %v1078_v31  ;;  %v1324_v31 = vld [vmem:[%s1788_s5] ss:$0 sm:$0xff] }
0x17ac   :  { %v1087_v40 = vsel %vm1084_vm4, %v1086_v38, %v1082_v15 }
0x17ad   :  { %v1093_v32 = vmul.f32 %v1091_v42, %v1087_v40 }
0x17f2   :  { %v1096_v39 = vpop.permute.xlu2 %1095 }
0x17f3   :  { %v1098_v41 = vmul.f32 %v1096_v39, %v1087_v40 }
0x17f5   :  { %1100 = vrot.lane.b32.xlu0 %v1098_v41, %s1512_s18 }
0x1867   :  { %v1101_v33 = vpop.permute.xlu0 %1100 }
0x1868   :  { %v1103_v35 = vadd.f32 %v1101_v33, %v1093_v32 }
0x186a   :  { %1436 = vtanh.f32 %v1103_v35  ;;  %v1161_v1 = vrot.slane %v1103_v35, 6 }
0x1870   :  { %v1437_v43 = vpop.eup %1436 }
0x1871   :  { %1106 = vrot.lane.b32.xlu1 %v1437_v43, %s1511_s17  ;;  %v1325_v43 = vld [vmem:[#allocation2] ss:$0 sm:$0xff] }
0x18e3   :  { %v1107_v36 = vpop.permute.xlu1 %1106 }
0x18e4   :  { %v1109_v44 = vmul.f32 %v1107_v36, %v1087_v40 }
0x18e6   :  { %v1111_v45 = vrot.slane %v1109_v44, 2 }
0x18e8   :  { %1112 = vrot.lane.b32.xlu2 %v1111_v45, %s1512_s18 }
0x1942   :  { %v1113_v46 = vpop.permute.xlu2 %1112 }
0x1943   :  { %1310 = vmatmul.msk.f32.vlgmr.msrb.gmra.mxu2 %vm105_vm6, %v1113_v46 }
0x19c6   :  { %v1133_v10 = vpop.f32.mrf.mxu2 }
0x19c7   :  { %v1137_v47 = vrot.slane %v1133_v10, 4 }
0x19c9   :  { %v1139_v48 = vadd.f32 %v1137_v47, %v1752_v54 }
0x19cb   :  { %1438 = vtanh.f32 %v1139_v48  ;;  %v1311_v50 = vmul.f32 -1.442695, %v1139_v48 }
0x19cd   :  { %1440 = vpow2.f32 %v1311_v50 }
0x19d1   :  { %v1439_v49 = vpop.eup %1438 }
0x19d2   :  { %1165 = vrot.lane.b32.xlu0 %v1439_v49, %s1511_s17 }
0x19d3   :  { %v1441_v51 = vpop.eup %1440 }
0x19d4   :  { %v1143_v52 = vadd.f32 1.0, %v1441_v51 }
0x19d6   :  { %1442 = vrcp.f32 %v1143_v52  ;;  %v1155_v58 = vand.u32 2147483648, %v1143_v52  ;;  %vm1149_vm1 = vweird.f32 %v1143_v52  ;;  %v1153_v59 = vand.u32 2147483647, %v1143_v52 }
0x19d8   :  { %v1156_v60 = vor.u32 1.1754944e-38, %v1155_v58  ;;  %vm1154_vm9 = vcmp.eq.f32.partialorder %v1153_v59, 8.507059e+37 }
0x19dc   :  { %v1443_v28 = vpop.eup %1442 }
0x19dd   :  { %v1145_v53 = vmul.f32 %v1443_v28, %v1143_v52  ;;  %vm1150_vm5 = vweird.f32 %v1443_v28 }
0x19de   :  { %vm1151_vm8 = vmor %vm1149_vm1, %vm1150_vm5 }
0x19df   :  { %v1146_v55 = vsub.f32 1.0, %v1145_v53 }
0x19e1   :  { %v1147_v56 = vmul.f32 %v1443_v28, %v1146_v55 }
0x19e3   :  { %v1148_v57 = vadd.f32 %v1443_v28, %v1147_v56 }
0x19e5   :  { %v1152_v63 = vsel %vm1151_vm8, %v1443_v28, %v1148_v57 }
0x19e6   :  { %v1157_v62 = vsel %vm1154_vm9, %v1156_v60, %v1152_v63 }
0x19e7   :  { %v1163_v34 = vmul.f32 %v1161_v1, %v1157_v62 }
0x1a44   :  { %v1166_v61 = vpop.permute.xlu0 %1165 }
0x1a45   :  { %v1168_v0 = vmul.f32 %v1166_v61, %v1157_v62 }
0x1a47   :  { %1170 = vrot.lane.b32.xlu1 %v1168_v0, %s1512_s18 }
0x1ab9   :  { %v1171_v2 = vpop.permute.xlu1 %1170 }
0x1aba   :  { %v1173_v3 = vadd.f32 %v1171_v2, %v1163_v34 }
0x1abc   :  { %1444 = vtanh.f32 %v1173_v3  ;;  %v1231_v7 = vrot.slane %v1173_v3, 6 }
0x1ac2   :  { %v1445_v4 = vpop.eup %1444 }
0x1ac3   :  { %1176 = vrot.lane.b32.xlu2 %v1445_v4, %s1511_s17 }
0x1b1d   :  { %v1177_v5 = vpop.permute.xlu2 %1176 }
0x1b1e   :  { %v1179_v6 = vmul.f32 %v1177_v5, %v1157_v62 }
0x1b20   :  { %v1181_v9 = vrot.slane %v1179_v6, 4 }
0x1b22   :  { %1182 = vrot.lane.b32.xlu0 %v1181_v9, %s1512_s18 }
0x1b94   :  { %v1183_v11 = vpop.permute.xlu0 %1182 }
0x1b95   :  { %1312 = vmatmul.msk.f32.vlgmr.msra.gmra.mxu3 %vm105_vm6, %v1183_v11 }
0x1c18   :  { %v1203_v12 = vpop.f32.mrf.mxu3 }
0x1c19   :  { %v1207_v13 = vrot.slane %v1203_v12, 2 }
0x1c1b   :  { %v1209_v8 = vadd.f32 %v1207_v13, %v1752_v54 }
0x1c1d   :  { %1446 = vtanh.f32 %v1209_v8  ;;  %v1313_v16 = vmul.f32 -1.442695, %v1209_v8 }
0x1c1f   :  { %1448 = vpow2.f32 %v1313_v16 }
0x1c23   :  { %v1447_v14 = vpop.eup %1446 }
0x1c24   :  { %1235 = vrot.lane.b32.xlu1 %v1447_v14, %s1511_s17 }
0x1c25   :  { %v1449_v18 = vpop.eup %1448 }
0x1c26   :  { %v1213_v19 = vadd.f32 1.0, %v1449_v18 }
0x1c28   :  { %1450 = vrcp.f32 %v1213_v19  ;;  %v1225_v26 = vand.u32 2147483648, %v1213_v19  ;;  %vm1219_vm6 = vweird.f32 %v1213_v19  ;;  %v1223_v27 = vand.u32 2147483647, %v1213_v19 }
0x1c2a   :  { %v1226_v21 = vor.u32 1.1754944e-38, %v1225_v26  ;;  %vm1224_vm12 = vcmp.eq.f32.partialorder %v1223_v27, 8.507059e+37 }
0x1c2c   :  { %1253 = vrot.lane.b32.xlu1 %v1324_v31, %s1513_s23 }
0x1c2e   :  { %v1451_v20 = vpop.eup %1450 }
0x1c2f   :  { %v1215_v22 = vmul.f32 %v1451_v20, %v1213_v19  ;;  %vm1220_vm10 = vweird.f32 %v1451_v20 }
0x1c30   :  { %vm1221_vm11 = vmor %vm1219_vm6, %vm1220_vm10 }
0x1c31   :  { %v1216_v23 = vsub.f32 1.0, %v1215_v22 }
0x1c33   :  { %v1217_v25 = vmul.f32 %v1451_v20, %v1216_v23 }
0x1c35   :  { %v1218_v17 = vadd.f32 %v1451_v20, %v1217_v25 }
0x1c37   :  { %v1222_v54 = vsel %vm1221_vm11, %v1451_v20, %v1218_v17 }
0x1c38   :  { %v1227_v30 = vsel %vm1224_vm12, %v1226_v21, %v1222_v54 }
0x1c39   :  { %v1233_v24 = vmul.f32 %v1231_v7, %v1227_v30 }
0x1c96   :  { %v1236_v29 = vpop.permute.xlu1 %1235 }
0x1c97   :  { %v1238_v37 = vmul.f32 %v1236_v29, %v1227_v30 }
0x1c99   :  { %1240 = vrot.lane.b32.xlu2 %v1238_v37, %s1512_s18 }
0x1c9e   :  { %v1254_v41 = vpop.permute.xlu1 %1253 }
0x1cf3   :  { %v1241_v15 = vpop.permute.xlu2 %1240 }
0x1cf4   :  { %v1243_v38 = vadd.f32 %v1241_v15, %v1233_v24 }
0x1cf6   :  { %1452 = vtanh.f32 %v1243_v38 }
0x1cfc   :  { %v1453_v39 = vpop.eup %1452 }
0x1cfd   :  { %1246 = vrot.lane.b32.xlu0 %v1453_v39, %s1511_s17 }
0x1d6f   :  { %v1247_v40 = vpop.permute.xlu0 %1246 }
0x1d70   :  { %v1249_v42 = vmul.f32 %v1247_v40, %v1227_v30 }
0x1d72   :  { %v1256_v32 = vmul.f32 %v1254_v41, %v1249_v42 }
0x1d74   :  { %1258 = vrot.lane.b32.xlu2 %v1256_v32, %s1512_s18 }
0x1dce   :  { %v1259_v33 = vpop.permute.xlu2 %1258 }
0x1dcf   :  { %v1262_v35 = vsel %vm1261_vm7, %v1259_v33, 0.0 }
0x1dd0   :  { %1263 = vadd.xlane.f32.xlu0 %v1262_v35 }
0x1e43   :  { %v1264_v36 = vpop.xlane.xlu0 %1263 }
0x1e44   :  { %v1269_v44 = vadd.f32 %v1325_v43, %v1264_v36 }
0x1e46   :  { %1271 = vst.msk [vmem:[%s1790_s7 - $0x6] sm:$0xc0] %vm1270_vm13, %v1269_v44 }
0x1e47   :  { %1276 = vsyncpa [#allocation4], 1 }
0x1e48   :  { %1277 = vsyncpa [#allocation6], 1 }

</bundles_post_ra>
